<compile_context>
chip_gen: v6e
topology: v6e:2x2x1
jax: 0.10.0
libtpu: 0.0.40
codegen_flags: <defaults>
</compile_context>

<pallas_src>
import functools
import math

import jax
import jax.numpy as jnp
import numpy as np
from jax.experimental import pallas as pl
from jax.experimental.pallas import tpu as pltpu

# AdaptiveLIF module defaults
RM = 1.0
DT = 1.0
B0 = 0.2
BETA = 1.8


# --------------------------------------------------------------------------
# Fused kernel: both DelayedSynapse steps + AdaptiveLIF update for one t.
# Grid axis 0 == time (sequential).
# --------------------------------------------------------------------------
def _fused_block_kernel(t_max, x_ref, w_in_ref, b_in_ref, w_hh_ref, b_hh_ref,
                        alpha_ref, rho_ref, spk_ref,
                        u_ref, eta_ref, xring_ref, sring_ref):
    t = pl.program_id(0)

    @pl.when(t == 0)
    def _():                                     # reset_state()
        u_ref[...] = jnp.zeros_like(u_ref)
        eta_ref[...] = jnp.full_like(eta_ref, B0)
        xring_ref[...] = jnp.zeros_like(xring_ref)   # zeros == "no past input"
        sring_ref[...] = jnp.zeros_like(sring_ref)   # zeros == "no past spikes"

    cur_slot = t % t_max
    xring_ref[cur_slot] = x_ref[0]               # push inputs[t] into the ring

    # sparse_in:  drive = b_in + sum_j inputs[t-j] @ (DW_in[j] * W_in_masked)
    # (slots of negative time hold zeros, so no explicit bounds handling.)
    drive = jnp.dot(xring_ref[cur_slot], w_in_ref[0],
                    preferred_element_type=jnp.float32)
    for j in range(1, t_max):
        slot = (t - j + t_max) % t_max
        drive = drive + jnp.dot(xring_ref[slot], w_in_ref[j],
                                preferred_element_type=jnp.float32)
    drive = drive + b_in_ref[...]

    # sparse_hh: recurrent drive from the last t_max spike vectors.  The
    # PyTorch block only calls sparse_hh from the second step on (`h_last is
    # not 0`), so its contribution (incl. bias) is gated on t > 0.
    rec = jnp.dot(sring_ref[(t - 1 + t_max) % t_max], w_hh_ref[0],
                  preferred_element_type=jnp.float32)
    for j in range(1, t_max):
        slot = (t - 1 - j + t_max) % t_max
        rec = rec + jnp.dot(sring_ref[slot], w_hh_ref[j],
                            preferred_element_type=jnp.float32)
    rec = rec + b_hh_ref[...]
    gate = (t > 0).astype(jnp.float32)
    drive = drive + gate * rec

    # AdaptiveLIF: charge / fire / adapt (kept in f32 on the VPU).
    alpha = alpha_ref[...]
    rho = rho_ref[...]
    eta = eta_ref[...]
    u = u_ref[...] * alpha + (1.0 - alpha) * RM * drive
    v_th = B0 + BETA * eta
    spikes = (u - v_th > 0.0).astype(jnp.float32)    # surrogate forward
    u_ref[...] = u - spikes * (eta * BETA + B0)
    eta_ref[...] = rho * eta + (1.0 - rho) * spikes

    spk_ref[0] = spikes
    sring_ref[cur_slot] = spikes                 # becomes h_last for step t+1


# --------------------------------------------------------------------------
# Driver: reset_state() followed by T calls of forward(), all in one kernel.
# --------------------------------------------------------------------------
def delayed_recurrent_block_forward(inputs_seq, params, *, t_max):
    T, B, n_in = inputs_seq.shape
    h = params["w_in_masked"].shape[1]

    # Fold the one-hot delay tensor into per-delay masked weights host-side:
    #   W_j = DW[j] * (weight.T * mask.T)
    w_in_d = (params["dw_in"] * params["w_in_masked"][None]).astype(jnp.float32)
    w_hh_d = (params["dw_hh"] * params["w_hh_masked"][None]).astype(jnp.float32)
    b_in = params["b_in"].reshape(1, h)
    b_hh = params["b_hh"].reshape(1, h)

    def full_spec(shape):  # whole array resident in VMEM, fetched once
        return pl.BlockSpec(shape, lambda t, _n=len(shape): (0,) * _n)

    kernel = functools.partial(_fused_block_kernel, t_max)
    return pl.pallas_call(
        kernel,
        out_shape=jax.ShapeDtypeStruct((T, B, h), jnp.float32),
        grid=(T,),
        in_specs=[
            pl.BlockSpec((1, B, n_in), lambda t: (t, 0, 0)),   # inputs[t]
            full_spec((t_max, n_in, h)),                       # W_in per delay
            full_spec((1, h)),                                 # b_in
            full_spec((t_max, h, h)),                          # W_hh per delay
            full_spec((1, h)),                                 # b_hh
            full_spec((1, h)),                                 # alpha
            full_spec((1, h)),                                 # rho
        ],
        out_specs=pl.BlockSpec((1, B, h), lambda t: (t, 0, 0)),
        scratch_shapes=[
            pltpu.VMEM((B, h), jnp.float32),             # u
            pltpu.VMEM((B, h), jnp.float32),             # eta
            pltpu.VMEM((t_max, B, n_in), jnp.float32),   # input delay ring
            pltpu.VMEM((t_max, B, h), jnp.float32),      # spike delay ring
        ],
        compiler_params=pltpu.CompilerParams(
            dimension_semantics=("arbitrary",)),         # recurrence over T
    )(inputs_seq, w_in_d, b_in, w_hh_d, b_hh, params["alpha"], params["rho"])


# --------------------------------------------------------------------------
# Deterministic parameter init (shapes from the module __init__).
# Weights / biases are quantized to multiples of 1/128 so the synapse math is
# exact in f32 -> the kernel (MXU) and the numpy reference agree bitwise.
# --------------------------------------------------------------------------
def init_params(key, in_size, h_size, t_max, sparsity=0.3, zero_hh_weight=True):
    ks = jax.random.split(key, 8)

    def q(a):
        return jnp.round(a * 128.0) / 128.0

    def linear_init(kw, kb, fan_in, shape_w):
        bound = 1.0 / math.sqrt(fan_in)
        w = q(jax.random.uniform(kw, shape_w, jnp.float32, -bound, bound))
        b = q(jax.random.uniform(kb, (shape_w[0],), jnp.float32, -bound, bound))
        return w, b

    w_in, b_in = linear_init(ks[0], ks[1], in_size, (h_size, in_size))
    w_hh, b_hh = linear_init(ks[2], ks[3], h_size, (h_size, h_size))

    def mask_low_weight(w):  # keep top `sparsity` fraction by |w|
        pcnt = jnp.percentile(jnp.abs(w), 100.0 * (1.0 - sparsity))
        return (jnp.abs(w) >= pcnt).astype(jnp.float32)

    mask_in = mask_low_weight(w_in)
    mask_hh = mask_low_weight(w_hh)        # mask computed before zeroing
    if zero_hh_weight:
        w_hh = jnp.zeros_like(w_hh)        # nn.init.zeros_(sparse_hh.weight)

    delay_in = jax.random.randint(ks[4], (in_size, h_size), 0, t_max)
    delay_hh = jax.random.randint(ks[5], (h_size, h_size), 0, t_max)

    def one_hot_delay(delay):  # DW[i] = (delay == i)
        return (delay[None] == jnp.arange(t_max)[:, None, None]).astype(jnp.float32)

    tau_m = 200.0 + 25.0 * jax.random.normal(ks[6], (h_size,), jnp.float32)
    tau_adp = 20.0 + 5.0 * jax.random.normal(ks[7], (h_size,), jnp.float32)

    return dict(
        w_in_masked=(w_in * mask_in).T,    # [in, h]  (= weight.t() * mask.t())
        b_in=b_in,
        dw_in=one_hot_delay(delay_in),     # [t_max, in, h]
        w_hh_masked=(w_hh * mask_hh).T,    # [h, h]
        b_hh=b_hh,
        dw_hh=one_hot_delay(delay_hh),     # [t_max, h, h]
        alpha=jnp.exp(-DT / tau_m).reshape(1, -1),
        rho=jnp.exp(-DT / tau_adp).reshape(1, -1),
    )


# --------------------------------------------------------------------------
# Pure-numpy reference: faithfully mirrors the PyTorch buffer-based loop
# (scatter into delayed_input_buffer + masked inner product + sum).
# --------------------------------------------------------------------------
def _ref_synapse_step(z, buf, dw, wm, b, cur, T, t_max):
    buf = buf.copy()
    for i in range(t_max):
        if cur + i >= T:
            break
        buf[cur + i] = buf[cur + i] + z[:, :, None] * dw[i][None]
    out = (buf[cur] * wm[None]).sum(axis=1) + b[None]
    return out.astype(np.float32), buf


def reference_forward(inputs_seq, params, *, T, t_max):
    p = {k: np.asarray(v, np.float32) for k, v in params.items()}
    _, B, in_size = inputs_seq.shape
    h = p["w_in_masked"].shape[1]
    buf_in = np.zeros((T, B, in_size, h), np.float32)
    buf_hh = np.zeros((T, B, h, h), np.float32)
    u = np.zeros((B, h), np.float32)
    eta = np.full((B, h), B0, np.float32)
    h_last = None
    outs = []
    for t in range(T):
        x, buf_in = _ref_synapse_step(inputs_seq[t], buf_in, p["dw_in"],
                                      p["w_in_masked"], p["b_in"], t, T, t_max)
        if t > 0:  # PyTorch: `if self.h_last is not 0` -> sparse_hh lags one step
            xr, buf_hh = _ref_synapse_step(h_last, buf_hh, p["dw_hh"],
                                           p["w_hh_masked"], p["b_hh"],
                                           t - 1, T, t_max)
            x = x + xr
        u = u * p["alpha"] + (1.0 - p["alpha"]) * RM * x
        v_th = B0 + BETA * eta
        spikes = (u - v_th > 0.0).astype(np.float32)
        u = u - spikes * (eta * BETA + B0)
        eta = p["rho"] * eta + (1.0 - p["rho"]) * spikes
        h_last = spikes
        outs.append(spikes)
    return np.stack(outs, axis=0)


if __name__ == "__main__":
    T, t_max = 8, 4
    B, in_size, h_size = 8, 64, 128

    key = jax.random.PRNGKey(0)
    k_param, k_x = jax.random.split(key)
    # Inputs are multiples of 16 in [0, 496]: large enough that the adaptive
    # LIF (tau_m ~ N(200,25)) spikes, and exactly representable so the MXU
    # matmuls are bit-exact vs. the numpy reference.
    inputs_seq = 16.0 * jax.random.randint(
        k_x, (T, B, in_size), 0, 32).astype(jnp.float32)

    # Run twice: (a) faithful init (sparse_hh weight zeroed, as in the module),
    # (b) nonzero recurrent weights to also exercise the spike delay ring.
    for zero_hh in (True, False):
        params = init_params(k_param, in_size, h_size, t_max,
                             sparsity=0.3, zero_hh_weight=zero_hh)
        spikes_seq = delayed_recurrent_block_forward(
            inputs_seq, params, t_max=t_max)
        spikes_seq = jax.block_until_ready(spikes_seq)

        ref = reference_forward(np.asarray(inputs_seq, np.float32), params,
                                T=T, t_max=t_max)
        assert spikes_seq.shape == (T, B, h_size)
        np.testing.assert_allclose(np.asarray(spikes_seq), ref,
                                   atol=1e-6, rtol=0)

    print("KERNEL_OK")
</pallas_src>

<mosaic_0001>
module attributes {stable_mosaic.version = 11 : i64} {
  func.func @_fused_block_kernel(%arg0: i32, %arg1: memref<1x8x64xf32, #tpu.memory_space<vmem>>, %arg2: memref<4x64x128xf32, #tpu.memory_space<vmem>>, %arg3: memref<1x128xf32, #tpu.memory_space<vmem>>, %arg4: memref<4x128x128xf32, #tpu.memory_space<vmem>>, %arg5: memref<1x128xf32, #tpu.memory_space<vmem>>, %arg6: memref<1x128xf32, #tpu.memory_space<vmem>>, %arg7: memref<1x128xf32, #tpu.memory_space<vmem>>, %arg8: memref<1x8x128xf32, #tpu.memory_space<vmem>>, %arg9: memref<8x128xf32, #tpu.memory_space<vmem>>, %arg10: memref<8x128xf32, #tpu.memory_space<vmem>>, %arg11: memref<4x8x64xf32, #tpu.memory_space<vmem>>, %arg12: memref<4x8x128xf32, #tpu.memory_space<vmem>>) attributes {dimension_semantics = [#tpu.dimension_semantics<arbitrary>], iteration_bounds = array<i64: 8>, scalar_prefetch = 0 : i64, scratch_operands = 4 : i64, tpu.core_type = #tpu.core_type<tc>, window_params = [{transform_indices = @transform_0, window_bounds = array<i64: 1, 8, 64>}, {pipeline_mode = #tpu.pipeline_mode<synchronous>, transform_indices = @transform_1, window_bounds = array<i64: 4, 64, 128>}, {pipeline_mode = #tpu.pipeline_mode<synchronous>, transform_indices = @transform_2, window_bounds = array<i64: 1, 128>}, {pipeline_mode = #tpu.pipeline_mode<synchronous>, transform_indices = @transform_3, window_bounds = array<i64: 4, 128, 128>}, {pipeline_mode = #tpu.pipeline_mode<synchronous>, transform_indices = @transform_4, window_bounds = array<i64: 1, 128>}, {pipeline_mode = #tpu.pipeline_mode<synchronous>, transform_indices = @transform_5, window_bounds = array<i64: 1, 128>}, {pipeline_mode = #tpu.pipeline_mode<synchronous>, transform_indices = @transform_6, window_bounds = array<i64: 1, 128>}, {transform_indices = @transform_7, window_bounds = array<i64: 1, 8, 128>}]} {
    %c0_i32 = arith.constant 0 : i32
    %0 = arith.cmpi eq, %arg0, %c0_i32 : i32
    %1 = arith.extui %0 : i1 to i32
    %c0_i32_0 = arith.constant 0 : i32
    %2 = arith.cmpi ne, %1, %c0_i32_0 : i32
    scf.if %2 {
      %cst_140 = arith.constant 0.000000e+00 : f32
      %216 = vector.broadcast %cst_140 : f32 to vector<8x128xf32>
      %c0_141 = arith.constant 0 : index
      %c0_142 = arith.constant 0 : index
      %217 = vector.load %arg9[%c0_141, %c0_142] : memref<8x128xf32, #tpu.memory_space<vmem>>, vector<8x128xf32>
      tpu.vector_store %arg9[%c0_141, %c0_142], %216 {strides = array<i32>} : memref<8x128xf32, #tpu.memory_space<vmem>>, vector<8x128xf32>,
      %cst_143 = arith.constant 2.000000e-01 : f32
      %218 = vector.broadcast %cst_143 : f32 to vector<8x128xf32>
      %c0_144 = arith.constant 0 : index
      %c0_145 = arith.constant 0 : index
      %219 = vector.load %arg10[%c0_144, %c0_145] : memref<8x128xf32, #tpu.memory_space<vmem>>, vector<8x128xf32>
      tpu.vector_store %arg10[%c0_144, %c0_145], %218 {strides = array<i32>} : memref<8x128xf32, #tpu.memory_space<vmem>>, vector<8x128xf32>,
      %cst_146 = arith.constant 0.000000e+00 : f32
      %220 = vector.broadcast %cst_146 : f32 to vector<4x8x64xf32>
      %c0_147 = arith.constant 0 : index
      %c0_148 = arith.constant 0 : index
      %c0_149 = arith.constant 0 : index
      %221 = vector.load %arg11[%c0_147, %c0_148, %c0_149] : memref<4x8x64xf32, #tpu.memory_space<vmem>>, vector<4x8x64xf32>
      tpu.vector_store %arg11[%c0_147, %c0_148, %c0_149], %220 {strides = array<i32>} : memref<4x8x64xf32, #tpu.memory_space<vmem>>, vector<4x8x64xf32>,
      %cst_150 = arith.constant 0.000000e+00 : f32
      %222 = vector.broadcast %cst_150 : f32 to vector<4x8x128xf32>
      %c0_151 = arith.constant 0 : index
      %c0_152 = arith.constant 0 : index
      %c0_153 = arith.constant 0 : index
      %223 = vector.load %arg12[%c0_151, %c0_152, %c0_153] : memref<4x8x128xf32, #tpu.memory_space<vmem>>, vector<4x8x128xf32>
      tpu.vector_store %arg12[%c0_151, %c0_152, %c0_153], %222 {strides = array<i32>} : memref<4x8x128xf32, #tpu.memory_space<vmem>>, vector<4x8x128xf32>,
    } else {
    }
    %c4_i32 = arith.constant 4 : i32
    %c0_i32_1 = arith.constant 0 : i32
    %3 = arith.cmpi eq, %c4_i32, %c0_i32_1 : i32
    %c1_i32 = arith.constant 1 : i32
    %4 = arith.select %3, %c1_i32, %c4_i32 : i32
    %5 = arith.remsi %arg0, %4 : i32
    %c0_i32_2 = arith.constant 0 : i32
    %6 = arith.cmpi ne, %5, %c0_i32_2 : i32
    %c0_i32_3 = arith.constant 0 : i32
    %7 = arith.cmpi slt, %5, %c0_i32_3 : i32
    %c0_i32_4 = arith.constant 0 : i32
    %8 = arith.cmpi slt, %4, %c0_i32_4 : i32
    %9 = arith.xori %7, %8 : i1
    %10 = arith.andi %9, %6 : i1
    %11 = arith.addi %5, %4 : i32
    %12 = arith.select %10, %11, %5 : i32
    %c0 = arith.constant 0 : index
    %c0_5 = arith.constant 0 : index
    %c0_6 = arith.constant 0 : index
    %13 = vector.load %arg1[%c0, %c0_5, %c0_6] : memref<1x8x64xf32, #tpu.memory_space<vmem>>, vector<1x8x64xf32>
    %14 = vector.shape_cast %13 : vector<1x8x64xf32> to vector<8x64xf32>
    %15 = arith.index_cast %12 : i32 to index
    %c0_7 = arith.constant 0 : index
    %c0_8 = arith.constant 0 : index
    %16 = vector.load %arg11[%15, %c0_7, %c0_8] : memref<4x8x64xf32, #tpu.memory_space<vmem>>, vector<1x8x64xf32>
    %17 = vector.shape_cast %16 : vector<1x8x64xf32> to vector<8x64xf32>
    %18 = vector.shape_cast %14 : vector<8x64xf32> to vector<1x8x64xf32>
    tpu.vector_store %arg11[%15, %c0_7, %c0_8], %18 {strides = array<i32>} : memref<4x8x64xf32, #tpu.memory_space<vmem>>, vector<1x8x64xf32>,
    %19 = arith.index_cast %12 : i32 to index
    %c0_9 = arith.constant 0 : index
    %c0_10 = arith.constant 0 : index
    %20 = vector.load %arg11[%19, %c0_9, %c0_10] : memref<4x8x64xf32, #tpu.memory_space<vmem>>, vector<1x8x64xf32>
    %21 = vector.shape_cast %20 : vector<1x8x64xf32> to vector<8x64xf32>
    %c0_11 = arith.constant 0 : index
    %c0_12 = arith.constant 0 : index
    %c0_13 = arith.constant 0 : index
    %22 = vector.load %arg2[%c0_11, %c0_12, %c0_13] : memref<4x64x128xf32, #tpu.memory_space<vmem>>, vector<1x64x128xf32>
    %23 = vector.shape_cast %22 : vector<1x64x128xf32> to vector<64x128xf32>
    %cst = arith.constant dense<0.000000e+00> : vector<8x128xf32>
    %24 = tpu.matmul %21, %23, %cst {dimension_numbers = #tpu.dot_dimension_numbers<[1], [0], [0], [1], [0, 0, 1, 1], [], []>} : vector<8x64xf32>, vector<64x128xf32>, vector<8x128xf32> -> vector<8x128xf32>
    %c1_i32_14 = arith.constant 1 : i32
    %25 = arith.subi %arg0, %c1_i32_14 : i32
    %c4_i32_15 = arith.constant 4 : i32
    %26 = arith.addi %25, %c4_i32_15 : i32
    %c4_i32_16 = arith.constant 4 : i32
    %c0_i32_17 = arith.constant 0 : i32
    %27 = arith.cmpi eq, %c4_i32_16, %c0_i32_17 : i32
    %c1_i32_18 = arith.constant 1 : i32
    %28 = arith.select %27, %c1_i32_18, %c4_i32_16 : i32
    %29 = arith.remsi %26, %28 : i32
    %c0_i32_19 = arith.constant 0 : i32
    %30 = arith.cmpi ne, %29, %c0_i32_19 : i32
    %c0_i32_20 = arith.constant 0 : i32
    %31 = arith.cmpi slt, %29, %c0_i32_20 : i32
    %c0_i32_21 = arith.constant 0 : i32
    %32 = arith.cmpi slt, %28, %c0_i32_21 : i32
    %33 = arith.xori %31, %32 : i1
    %34 = arith.andi %33, %30 : i1
    %35 = arith.addi %29, %28 : i32
    %36 = arith.select %34, %35, %29 : i32
    %37 = arith.index_cast %36 : i32 to index
    %c0_22 = arith.constant 0 : index
    %c0_23 = arith.constant 0 : index
    %38 = vector.load %arg11[%37, %c0_22, %c0_23] : memref<4x8x64xf32, #tpu.memory_space<vmem>>, vector<1x8x64xf32>
    %39 = vector.shape_cast %38 : vector<1x8x64xf32> to vector<8x64xf32>
    %c1 = arith.constant 1 : index
    %c0_24 = arith.constant 0 : index
    %c0_25 = arith.constant 0 : index
    %40 = vector.load %arg2[%c1, %c0_24, %c0_25] : memref<4x64x128xf32, #tpu.memory_space<vmem>>, vector<1x64x128xf32>
    %41 = vector.shape_cast %40 : vector<1x64x128xf32> to vector<64x128xf32>
    %cst_26 = arith.constant dense<0.000000e+00> : vector<8x128xf32>
    %42 = tpu.matmul %39, %41, %cst_26 {dimension_numbers = #tpu.dot_dimension_numbers<[1], [0], [0], [1], [0, 0, 1, 1], [], []>} : vector<8x64xf32>, vector<64x128xf32>, vector<8x128xf32> -> vector<8x128xf32>
    %43 = arith.addf %24, %42 : vector<8x128xf32>
    %c2_i32 = arith.constant 2 : i32
    %44 = arith.subi %arg0, %c2_i32 : i32
    %c4_i32_27 = arith.constant 4 : i32
    %45 = arith.addi %44, %c4_i32_27 : i32
    %c4_i32_28 = arith.constant 4 : i32
    %c0_i32_29 = arith.constant 0 : i32
    %46 = arith.cmpi eq, %c4_i32_28, %c0_i32_29 : i32
    %c1_i32_30 = arith.constant 1 : i32
    %47 = arith.select %46, %c1_i32_30, %c4_i32_28 : i32
    %48 = arith.remsi %45, %47 : i32
    %c0_i32_31 = arith.constant 0 : i32
    %49 = arith.cmpi ne, %48, %c0_i32_31 : i32
    %c0_i32_32 = arith.constant 0 : i32
    %50 = arith.cmpi slt, %48, %c0_i32_32 : i32
    %c0_i32_33 = arith.constant 0 : i32
    %51 = arith.cmpi slt, %47, %c0_i32_33 : i32
    %52 = arith.xori %50, %51 : i1
    %53 = arith.andi %52, %49 : i1
    %54 = arith.addi %48, %47 : i32
    %55 = arith.select %53, %54, %48 : i32
    %56 = arith.index_cast %55 : i32 to index
    %c0_34 = arith.constant 0 : index
    %c0_35 = arith.constant 0 : index
    %57 = vector.load %arg11[%56, %c0_34, %c0_35] : memref<4x8x64xf32, #tpu.memory_space<vmem>>, vector<1x8x64xf32>
    %58 = vector.shape_cast %57 : vector<1x8x64xf32> to vector<8x64xf32>
    %c2 = arith.constant 2 : index
    %c0_36 = arith.constant 0 : index
    %c0_37 = arith.constant 0 : index
    %59 = vector.load %arg2[%c2, %c0_36, %c0_37] : memref<4x64x128xf32, #tpu.memory_space<vmem>>, vector<1x64x128xf32>
    %60 = vector.shape_cast %59 : vector<1x64x128xf32> to vector<64x128xf32>
    %cst_38 = arith.constant dense<0.000000e+00> : vector<8x128xf32>
    %61 = tpu.matmul %58, %60, %cst_38 {dimension_numbers = #tpu.dot_dimension_numbers<[1], [0], [0], [1], [0, 0, 1, 1], [], []>} : vector<8x64xf32>, vector<64x128xf32>, vector<8x128xf32> -> vector<8x128xf32>
    %62 = arith.addf %43, %61 : vector<8x128xf32>
    %c3_i32 = arith.constant 3 : i32
    %63 = arith.subi %arg0, %c3_i32 : i32
    %c4_i32_39 = arith.constant 4 : i32
    %64 = arith.addi %63, %c4_i32_39 : i32
    %c4_i32_40 = arith.constant 4 : i32
    %c0_i32_41 = arith.constant 0 : i32
    %65 = arith.cmpi eq, %c4_i32_40, %c0_i32_41 : i32
    %c1_i32_42 = arith.constant 1 : i32
    %66 = arith.select %65, %c1_i32_42, %c4_i32_40 : i32
    %67 = arith.remsi %64, %66 : i32
    %c0_i32_43 = arith.constant 0 : i32
    %68 = arith.cmpi ne, %67, %c0_i32_43 : i32
    %c0_i32_44 = arith.constant 0 : i32
    %69 = arith.cmpi slt, %67, %c0_i32_44 : i32
    %c0_i32_45 = arith.constant 0 : i32
    %70 = arith.cmpi slt, %66, %c0_i32_45 : i32
    %71 = arith.xori %69, %70 : i1
    %72 = arith.andi %71, %68 : i1
    %73 = arith.addi %67, %66 : i32
    %74 = arith.select %72, %73, %67 : i32
    %75 = arith.index_cast %74 : i32 to index
    %c0_46 = arith.constant 0 : index
    %c0_47 = arith.constant 0 : index
    %76 = vector.load %arg11[%75, %c0_46, %c0_47] : memref<4x8x64xf32, #tpu.memory_space<vmem>>, vector<1x8x64xf32>
    %77 = vector.shape_cast %76 : vector<1x8x64xf32> to vector<8x64xf32>
    %c3 = arith.constant 3 : index
    %c0_48 = arith.constant 0 : index
    %c0_49 = arith.constant 0 : index
    %78 = vector.load %arg2[%c3, %c0_48, %c0_49] : memref<4x64x128xf32, #tpu.memory_space<vmem>>, vector<1x64x128xf32>
    %79 = vector.shape_cast %78 : vector<1x64x128xf32> to vector<64x128xf32>
    %cst_50 = arith.constant dense<0.000000e+00> : vector<8x128xf32>
    %80 = tpu.matmul %77, %79, %cst_50 {dimension_numbers = #tpu.dot_dimension_numbers<[1], [0], [0], [1], [0, 0, 1, 1], [], []>} : vector<8x64xf32>, vector<64x128xf32>, vector<8x128xf32> -> vector<8x128xf32>
    %81 = arith.addf %62, %80 : vector<8x128xf32>
    %c0_51 = arith.constant 0 : index
    %c0_52 = arith.constant 0 : index
    %82 = vector.load %arg3[%c0_51, %c0_52] : memref<1x128xf32, #tpu.memory_space<vmem>>, vector<1x128xf32>
    %83 = vector.broadcast %82 : vector<1x128xf32> to vector<8x128xf32>
    %84 = arith.addf %81, %83 : vector<8x128xf32>
    %c1_i32_53 = arith.constant 1 : i32
    %85 = arith.subi %arg0, %c1_i32_53 : i32
    %c4_i32_54 = arith.constant 4 : i32
    %86 = arith.addi %85, %c4_i32_54 : i32
    %c4_i32_55 = arith.constant 4 : i32
    %c0_i32_56 = arith.constant 0 : i32
    %87 = arith.cmpi eq, %c4_i32_55, %c0_i32_56 : i32
    %c1_i32_57 = arith.constant 1 : i32
    %88 = arith.select %87, %c1_i32_57, %c4_i32_55 : i32
    %89 = arith.remsi %86, %88 : i32
    %c0_i32_58 = arith.constant 0 : i32
    %90 = arith.cmpi ne, %89, %c0_i32_58 : i32
    %c0_i32_59 = arith.constant 0 : i32
    %91 = arith.cmpi slt, %89, %c0_i32_59 : i32
    %c0_i32_60 = arith.constant 0 : i32
    %92 = arith.cmpi slt, %88, %c0_i32_60 : i32
    %93 = arith.xori %91, %92 : i1
    %94 = arith.andi %93, %90 : i1
    %95 = arith.addi %89, %88 : i32
    %96 = arith.select %94, %95, %89 : i32
    %97 = arith.index_cast %96 : i32 to index
    %c0_61 = arith.constant 0 : index
    %c0_62 = arith.constant 0 : index
    %98 = vector.load %arg12[%97, %c0_61, %c0_62] : memref<4x8x128xf32, #tpu.memory_space<vmem>>, vector<1x8x128xf32>
    %99 = vector.shape_cast %98 : vector<1x8x128xf32> to vector<8x128xf32>
    %c0_63 = arith.constant 0 : index
    %c0_64 = arith.constant 0 : index
    %c0_65 = arith.constant 0 : index
    %100 = vector.load %arg4[%c0_63, %c0_64, %c0_65] : memref<4x128x128xf32, #tpu.memory_space<vmem>>, vector<1x128x128xf32>
    %101 = vector.shape_cast %100 : vector<1x128x128xf32> to vector<128x128xf32>
    %cst_66 = arith.constant dense<0.000000e+00> : vector<8x128xf32>
    %102 = tpu.matmul %99, %101, %cst_66 {dimension_numbers = #tpu.dot_dimension_numbers<[1], [0], [0], [1], [0, 0, 1, 1], [], []>} : vector<8x128xf32>, vector<128x128xf32>, vector<8x128xf32> -> vector<8x128xf32>
    %c1_i32_67 = arith.constant 1 : i32
    %103 = arith.subi %arg0, %c1_i32_67 : i32
    %c1_i32_68 = arith.constant 1 : i32
    %104 = arith.subi %103, %c1_i32_68 : i32
    %c4_i32_69 = arith.constant 4 : i32
    %105 = arith.addi %104, %c4_i32_69 : i32
    %c4_i32_70 = arith.constant 4 : i32
    %c0_i32_71 = arith.constant 0 : i32
    %106 = arith.cmpi eq, %c4_i32_70, %c0_i32_71 : i32
    %c1_i32_72 = arith.constant 1 : i32
    %107 = arith.select %106, %c1_i32_72, %c4_i32_70 : i32
    %108 = arith.remsi %105, %107 : i32
    %c0_i32_73 = arith.constant 0 : i32
    %109 = arith.cmpi ne, %108, %c0_i32_73 : i32
    %c0_i32_74 = arith.constant 0 : i32
    %110 = arith.cmpi slt, %108, %c0_i32_74 : i32
    %c0_i32_75 = arith.constant 0 : i32
    %111 = arith.cmpi slt, %107, %c0_i32_75 : i32
    %112 = arith.xori %110, %111 : i1
    %113 = arith.andi %112, %109 : i1
    %114 = arith.addi %108, %107 : i32
    %115 = arith.select %113, %114, %108 : i32
    %116 = arith.index_cast %115 : i32 to index
    %c0_76 = arith.constant 0 : index
    %c0_77 = arith.constant 0 : index
    %117 = vector.load %arg12[%116, %c0_76, %c0_77] : memref<4x8x128xf32, #tpu.memory_space<vmem>>, vector<1x8x128xf32>
    %118 = vector.shape_cast %117 : vector<1x8x128xf32> to vector<8x128xf32>
    %c1_78 = arith.constant 1 : index
    %c0_79 = arith.constant 0 : index
    %c0_80 = arith.constant 0 : index
    %119 = vector.load %arg4[%c1_78, %c0_79, %c0_80] : memref<4x128x128xf32, #tpu.memory_space<vmem>>, vector<1x128x128xf32>
    %120 = vector.shape_cast %119 : vector<1x128x128xf32> to vector<128x128xf32>
    %cst_81 = arith.constant dense<0.000000e+00> : vector<8x128xf32>
    %121 = tpu.matmul %118, %120, %cst_81 {dimension_numbers = #tpu.dot_dimension_numbers<[1], [0], [0], [1], [0, 0, 1, 1], [], []>} : vector<8x128xf32>, vector<128x128xf32>, vector<8x128xf32> -> vector<8x128xf32>
    %122 = arith.addf %102, %121 : vector<8x128xf32>
    %c1_i32_82 = arith.constant 1 : i32
    %123 = arith.subi %arg0, %c1_i32_82 : i32
    %c2_i32_83 = arith.constant 2 : i32
    %124 = arith.subi %123, %c2_i32_83 : i32
    %c4_i32_84 = arith.constant 4 : i32
    %125 = arith.addi %124, %c4_i32_84 : i32
    %c4_i32_85 = arith.constant 4 : i32
    %c0_i32_86 = arith.constant 0 : i32
    %126 = arith.cmpi eq, %c4_i32_85, %c0_i32_86 : i32
    %c1_i32_87 = arith.constant 1 : i32
    %127 = arith.select %126, %c1_i32_87, %c4_i32_85 : i32
    %128 = arith.remsi %125, %127 : i32
    %c0_i32_88 = arith.constant 0 : i32
    %129 = arith.cmpi ne, %128, %c0_i32_88 : i32
    %c0_i32_89 = arith.constant 0 : i32
    %130 = arith.cmpi slt, %128, %c0_i32_89 : i32
    %c0_i32_90 = arith.constant 0 : i32
    %131 = arith.cmpi slt, %127, %c0_i32_90 : i32
    %132 = arith.xori %130, %131 : i1
    %133 = arith.andi %132, %129 : i1
    %134 = arith.addi %128, %127 : i32
    %135 = arith.select %133, %134, %128 : i32
    %136 = arith.index_cast %135 : i32 to index
    %c0_91 = arith.constant 0 : index
    %c0_92 = arith.constant 0 : index
    %137 = vector.load %arg12[%136, %c0_91, %c0_92] : memref<4x8x128xf32, #tpu.memory_space<vmem>>, vector<1x8x128xf32>
    %138 = vector.shape_cast %137 : vector<1x8x128xf32> to vector<8x128xf32>
    %c2_93 = arith.constant 2 : index
    %c0_94 = arith.constant 0 : index
    %c0_95 = arith.constant 0 : index
    %139 = vector.load %arg4[%c2_93, %c0_94, %c0_95] : memref<4x128x128xf32, #tpu.memory_space<vmem>>, vector<1x128x128xf32>
    %140 = vector.shape_cast %139 : vector<1x128x128xf32> to vector<128x128xf32>
    %cst_96 = arith.constant dense<0.000000e+00> : vector<8x128xf32>
    %141 = tpu.matmul %138, %140, %cst_96 {dimension_numbers = #tpu.dot_dimension_numbers<[1], [0], [0], [1], [0, 0, 1, 1], [], []>} : vector<8x128xf32>, vector<128x128xf32>, vector<8x128xf32> -> vector<8x128xf32>
    %142 = arith.addf %122, %141 : vector<8x128xf32>
    %c1_i32_97 = arith.constant 1 : i32
    %143 = arith.subi %arg0, %c1_i32_97 : i32
    %c3_i32_98 = arith.constant 3 : i32
    %144 = arith.subi %143, %c3_i32_98 : i32
    %c4_i32_99 = arith.constant 4 : i32
    %145 = arith.addi %144, %c4_i32_99 : i32
    %c4_i32_100 = arith.constant 4 : i32
    %c0_i32_101 = arith.constant 0 : i32
    %146 = arith.cmpi eq, %c4_i32_100, %c0_i32_101 : i32
    %c1_i32_102 = arith.constant 1 : i32
    %147 = arith.select %146, %c1_i32_102, %c4_i32_100 : i32
    %148 = arith.remsi %145, %147 : i32
    %c0_i32_103 = arith.constant 0 : i32
    %149 = arith.cmpi ne, %148, %c0_i32_103 : i32
    %c0_i32_104 = arith.constant 0 : i32
    %150 = arith.cmpi slt, %148, %c0_i32_104 : i32
    %c0_i32_105 = arith.constant 0 : i32
    %151 = arith.cmpi slt, %147, %c0_i32_105 : i32
    %152 = arith.xori %150, %151 : i1
    %153 = arith.andi %152, %149 : i1
    %154 = arith.addi %148, %147 : i32
    %155 = arith.select %153, %154, %148 : i32
    %156 = arith.index_cast %155 : i32 to index
    %c0_106 = arith.constant 0 : index
    %c0_107 = arith.constant 0 : index
    %157 = vector.load %arg12[%156, %c0_106, %c0_107] : memref<4x8x128xf32, #tpu.memory_space<vmem>>, vector<1x8x128xf32>
    %158 = vector.shape_cast %157 : vector<1x8x128xf32> to vector<8x128xf32>
    %c3_108 = arith.constant 3 : index
    %c0_109 = arith.constant 0 : index
    %c0_110 = arith.constant 0 : index
    %159 = vector.load %arg4[%c3_108, %c0_109, %c0_110] : memref<4x128x128xf32, #tpu.memory_space<vmem>>, vector<1x128x128xf32>
    %160 = vector.shape_cast %159 : vector<1x128x128xf32> to vector<128x128xf32>
    %cst_111 = arith.constant dense<0.000000e+00> : vector<8x128xf32>
    %161 = tpu.matmul %158, %160, %cst_111 {dimension_numbers = #tpu.dot_dimension_numbers<[1], [0], [0], [1], [0, 0, 1, 1], [], []>} : vector<8x128xf32>, vector<128x128xf32>, vector<8x128xf32> -> vector<8x128xf32>
    %162 = arith.addf %142, %161 : vector<8x128xf32>
    %c0_112 = arith.constant 0 : index
    %c0_113 = arith.constant 0 : index
    %163 = vector.load %arg5[%c0_112, %c0_113] : memref<1x128xf32, #tpu.memory_space<vmem>>, vector<1x128xf32>
    %164 = vector.broadcast %163 : vector<1x128xf32> to vector<8x128xf32>
    %165 = arith.addf %162, %164 : vector<8x128xf32>
    %c0_i32_114 = arith.constant 0 : i32
    %166 = arith.cmpi sgt, %arg0, %c0_i32_114 : i32
    %167 = arith.extui %166 : i1 to i32
    %168 = arith.sitofp %167 : i32 to f32
    %169 = vector.broadcast %168 : f32 to vector<8x128xf32>
    %170 = arith.mulf %169, %165 : vector<8x128xf32>
    %171 = arith.addf %84, %170 : vector<8x128xf32>
    %c0_115 = arith.constant 0 : index
    %c0_116 = arith.constant 0 : index
    %172 = vector.load %arg6[%c0_115, %c0_116] : memref<1x128xf32, #tpu.memory_space<vmem>>, vector<1x128xf32>
    %c0_117 = arith.constant 0 : index
    %c0_118 = arith.constant 0 : index
    %173 = vector.load %arg7[%c0_117, %c0_118] : memref<1x128xf32, #tpu.memory_space<vmem>>, vector<1x128xf32>
    %c0_119 = arith.constant 0 : index
    %c0_120 = arith.constant 0 : index
    %174 = vector.load %arg10[%c0_119, %c0_120] : memref<8x128xf32, #tpu.memory_space<vmem>>, vector<8x128xf32>
    %c0_121 = arith.constant 0 : index
    %c0_122 = arith.constant 0 : index
    %175 = vector.load %arg9[%c0_121, %c0_122] : memref<8x128xf32, #tpu.memory_space<vmem>>, vector<8x128xf32>
    %176 = vector.broadcast %172 : vector<1x128xf32> to vector<8x128xf32>
    %177 = arith.mulf %175, %176 : vector<8x128xf32>
    %cst_123 = arith.constant 1.000000e+00 : f32
    %178 = vector.broadcast %cst_123 : f32 to vector<1x128xf32>
    %179 = arith.subf %178, %172 : vector<1x128xf32>
    %cst_124 = arith.constant 1.000000e+00 : f32
    %180 = vector.broadcast %cst_124 : f32 to vector<1x128xf32>
    %181 = arith.mulf %179, %180 : vector<1x128xf32>
    %182 = vector.broadcast %181 : vector<1x128xf32> to vector<8x128xf32>
    %183 = arith.mulf %182, %171 : vector<8x128xf32>
    %184 = arith.addf %177, %183 : vector<8x128xf32>
    %cst_125 = arith.constant 1.800000e+00 : f32
    %185 = vector.broadcast %cst_125 : f32 to vector<8x128xf32>
    %186 = arith.mulf %185, %174 : vector<8x128xf32>
    %cst_126 = arith.constant 2.000000e-01 : f32
    %187 = vector.broadcast %cst_126 : f32 to vector<8x128xf32>
    %188 = arith.addf %187, %186 : vector<8x128xf32>
    %189 = arith.subf %184, %188 : vector<8x128xf32>
    %cst_127 = arith.constant 0.000000e+00 : f32
    %190 = vector.broadcast %cst_127 : f32 to vector<8x128xf32>
    %191 = arith.cmpf ogt, %189, %190 : vector<8x128xf32>
    %192 = arith.extui %191 : vector<8x128xi1> to vector<8x128xi32>
    %193 = arith.sitofp %192 : vector<8x128xi32> to vector<8x128xf32>
    %cst_128 = arith.constant 1.800000e+00 : f32
    %194 = vector.broadcast %cst_128 : f32 to vector<8x128xf32>
    %195 = arith.mulf %174, %194 : vector<8x128xf32>
    %cst_129 = arith.constant 2.000000e-01 : f32
    %196 = vector.broadcast %cst_129 : f32 to vector<8x128xf32>
    %197 = arith.addf %195, %196 : vector<8x128xf32>
    %198 = arith.mulf %193, %197 : vector<8x128xf32>
    %199 = arith.subf %184, %198 : vector<8x128xf32>
    %c0_130 = arith.constant 0 : index
    %c0_131 = arith.constant 0 : index
    %200 = vector.load %arg9[%c0_130, %c0_131] : memref<8x128xf32, #tpu.memory_space<vmem>>, vector<8x128xf32>
    tpu.vector_store %arg9[%c0_130, %c0_131], %199 {strides = array<i32>} : memref<8x128xf32, #tpu.memory_space<vmem>>, vector<8x128xf32>,
    %201 = vector.broadcast %173 : vector<1x128xf32> to vector<8x128xf32>
    %202 = arith.mulf %201, %174 : vector<8x128xf32>
    %cst_132 = arith.constant 1.000000e+00 : f32
    %203 = vector.broadcast %cst_132 : f32 to vector<1x128xf32>
    %204 = arith.subf %203, %173 : vector<1x128xf32>
    %205 = vector.broadcast %204 : vector<1x128xf32> to vector<8x128xf32>
    %206 = arith.mulf %205, %193 : vector<8x128xf32>
    %207 = arith.addf %202, %206 : vector<8x128xf32>
    %c0_133 = arith.constant 0 : index
    %c0_134 = arith.constant 0 : index
    %208 = vector.load %arg10[%c0_133, %c0_134] : memref<8x128xf32, #tpu.memory_space<vmem>>, vector<8x128xf32>
    tpu.vector_store %arg10[%c0_133, %c0_134], %207 {strides = array<i32>} : memref<8x128xf32, #tpu.memory_space<vmem>>, vector<8x128xf32>,
    %c0_135 = arith.constant 0 : index
    %c0_136 = arith.constant 0 : index
    %c0_137 = arith.constant 0 : index
    %209 = vector.load %arg8[%c0_135, %c0_136, %c0_137] : memref<1x8x128xf32, #tpu.memory_space<vmem>>, vector<1x8x128xf32>
    %210 = vector.shape_cast %209 : vector<1x8x128xf32> to vector<8x128xf32>
    %211 = vector.shape_cast %193 : vector<8x128xf32> to vector<1x8x128xf32>
    tpu.vector_store %arg8[%c0_135, %c0_136, %c0_137], %211 {strides = array<i32>} : memref<1x8x128xf32, #tpu.memory_space<vmem>>, vector<1x8x128xf32>,
    %212 = arith.index_cast %12 : i32 to index
    %c0_138 = arith.constant 0 : index
    %c0_139 = arith.constant 0 : index
    %213 = vector.load %arg12[%212, %c0_138, %c0_139] : memref<4x8x128xf32, #tpu.memory_space<vmem>>, vector<1x8x128xf32>
    %214 = vector.shape_cast %213 : vector<1x8x128xf32> to vector<8x128xf32>
    %215 = vector.shape_cast %193 : vector<8x128xf32> to vector<1x8x128xf32>
    tpu.vector_store %arg12[%212, %c0_138, %c0_139], %215 {strides = array<i32>} : memref<4x8x128xf32, #tpu.memory_space<vmem>>, vector<1x8x128xf32>,
    return
  }
  func.func @transform_0(%arg0: i32) -> (i32, i32, i32) {
    %c0_i32 = arith.constant 0 : i32
    %c0_i32_0 = arith.constant 0 : i32
    %c0_i32_1 = arith.constant 0 : i32
    return %arg0, %c0_i32, %c0_i32_0 : i32, i32, i32
  }
  func.func @transform_1(%arg0: i32) -> (i32, i32, i32) {
    %c0_i32 = arith.constant 0 : i32
    %c0_i32_0 = arith.constant 0 : i32
    %c0_i32_1 = arith.constant 0 : i32
    %c0_i32_2 = arith.constant 0 : i32
    return %c0_i32, %c0_i32_0, %c0_i32_1 : i32, i32, i32
  }
  func.func @transform_2(%arg0: i32) -> (i32, i32) {
    %c0_i32 = arith.constant 0 : i32
    %c0_i32_0 = arith.constant 0 : i32
    %c0_i32_1 = arith.constant 0 : i32
    return %c0_i32, %c0_i32_0 : i32, i32
  }
  func.func @transform_3(%arg0: i32) -> (i32, i32, i32) {
    %c0_i32 = arith.constant 0 : i32
    %c0_i32_0 = arith.constant 0 : i32
    %c0_i32_1 = arith.constant 0 : i32
    %c0_i32_2 = arith.constant 0 : i32
    return %c0_i32, %c0_i32_0, %c0_i32_1 : i32, i32, i32
  }
  func.func @transform_4(%arg0: i32) -> (i32, i32) {
    %c0_i32 = arith.constant 0 : i32
    %c0_i32_0 = arith.constant 0 : i32
    %c0_i32_1 = arith.constant 0 : i32
    return %c0_i32, %c0_i32_0 : i32, i32
  }
  func.func @transform_5(%arg0: i32) -> (i32, i32) {
    %c0_i32 = arith.constant 0 : i32
    %c0_i32_0 = arith.constant 0 : i32
    %c0_i32_1 = arith.constant 0 : i32
    return %c0_i32, %c0_i32_0 : i32, i32
  }
  func.func @transform_6(%arg0: i32) -> (i32, i32) {
    %c0_i32 = arith.constant 0 : i32
    %c0_i32_0 = arith.constant 0 : i32
    %c0_i32_1 = arith.constant 0 : i32
    return %c0_i32, %c0_i32_0 : i32, i32
  }
  func.func @transform_7(%arg0: i32) -> (i32, i32, i32) {
    %c0_i32 = arith.constant 0 : i32
    %c0_i32_0 = arith.constant 0 : i32
    %c0_i32_1 = arith.constant 0 : i32
    return %arg0, %c0_i32, %c0_i32_0 : i32, i32, i32
  }
}

</mosaic_0001>

<bundles_post_ra>
// kernel: tpu_custom_call.1
= control target key start
LH: loop header
LB: loop body
LE: loop exit
PB: predicated region body
PF: predicated region fallthrough
CT: control target
= control target key end

     0   :  { %s2292_s0 = inlined_call_operand.hbm [shape: f32[8,8,64], index: 0, kind: input, shape index: {}]   ;;  %s2293_s1 = inlined_call_operand.hbm [shape: f32[4,64,128], index: 1, kind: input, shape index: {}]   ;;  %s2294_s2 = inlined_call_operand.vmem [shape: f32[1,128], index: 2, kind: input, shape index: {}]   ;;  %s2295_s3 = inlined_call_operand.hbm [shape: f32[4,128,128], index: 3, kind: input, shape index: {}]   ;;  %s2296_s4 = inlined_call_operand.vmem [shape: f32[1,128], index: 4, kind: input, shape index: {}]   ;;  %s2297_s5 = inlined_call_operand.vmem [shape: f32[1,128], index: 5, kind: input, shape index: {}]   ;;  %s2298_s6 = inlined_call_operand.vmem [shape: f32[1,128], index: 6, kind: input, shape index: {}]   ;;  %s2299_s7 = inlined_call_operand.hbm [shape: f32[8,8,128], index: 7, kind: output, shape index: {}]  }
   0x1   :  { %2304 = sst [smem:[#allocation16_spill]] %s2293_s1 }
   0x2   :  { %2305 = sst [smem:[#allocation17_spill]] %s2295_s3 }
   0x3   :  { %12 = vsyncpa [#allocation7], 0 }
   0x4   :  { %14 = vsyncpa [#allocation7 + $0x1], 0 }
   0x5   :  { %15 = vsyncpa [#allocation10], 0 }
   0x6   :  { %16 = vsyncpa [#allocation8], 0 }
   0x7   :  { %18 = vsyncpa [#allocation8 + $0x1], 0  ;;  %s1912_s24 = smov 0   ;;  %s1914_s25 = smov 0  }
   0x8   :  { %s1916_s26 = smov 0   ;;  %s1918_s27 = smov 0  }
   0x9 LB: > { %s1933_s28 = sadd.s32 4294967295, %s1860_s27   ;;  %s1279_s29 = sadd.s32 4294967294, %s1860_s27   ;;  %s1860_s27 = sphi %s1918_s27, %s2325_s27   ;;  %s1856_s26 = sphi %s1916_s26, %s2324_s26   ;;  %s1852_s25 = sphi %s1914_s25, %s2323_s25   ;;  %s1848_s24 = sphi %s1912_s24, %s2322_s24  }
   0xa   : > { %p44_p0 = scmp.ne.s32.totalorder %s1852_s25, %s1848_s24  ;;  %p2300_p1 = scmp.eq.s32.totalorder %s1933_s28, 0 }
   0xb   : > { %p200_p3 = scmp.eq.s32.totalorder %s1279_s29, 7  ;;  %p1280_p5 = scmp.ge.s32.totalorder %s1860_s27, 1 }
   0xc   : > { %p1942_p4 = por %p2300_p1, %p44_p0  ;;  %p207_p7 = scmp.lt.s32.totalorder %s1860_s27, 9 }
   0xd   : > { %p1947_p6 = por %p200_p3, %p44_p0  ;;  %s1862_s10 = smov [#allocation9]  }
   0xe   : > { %s2306_s30 = scalar_select %p1942_p4, 1, 0 }
   0xf   : > { %s2307_s8 = scalar_select %p1947_p6, 1, 0 }
  0x10   : > { %p1953_p9 = pnand %p1280_p5, %p207_p7  ;;  %s219_s11 = sshll.u32 %s1862_s10, 4  ;;  %s220_s11 = int_to_ptr.vmem [resolvable:$true] %s219_s11 }
  0x11   : > { %s1863_s13 = smov [#allocation11]   ;;  %s1723_s15 = scalar_lea.vmem %s220_s11, 4096 }
  0x12   : > { %s2308_s9 = scalar_select %p1953_p9, 1, 0 }
  0x13   : > { %p1651_p10 = pneg %p1953_p9  ;;  %s235_s14 = sshll.u32 %s1863_s13, 4  ;;  %s236_s14 = int_to_ptr.vmem [resolvable:$true] %s235_s14 }
  0x14   : > { %p1724_p13 = scmp.ne.s32.totalorder %s220_s11, %s1723_s15  ;;  %p1731_p5 = scmp.lt.s32.totalorder %s220_s11, %s220_s11 }
  0x15   : > { %p1961_p11 = pnand %p1651_p10, %p2300_p1  ;;  %p1732_p7 = scmp.lt.s32.totalorder %s1723_s15, %s1723_s15 }
  0x17   : > { %p1714_p12 = pneg %p1961_p11  ;;  %p1733_p8 = por %p1732_p7, %p1731_p5 }
  0x19   : > { %p1726_p0 = pnand %p1724_p13, %p1714_p12 }
  0x1b   : > { %p1727_p3 = pneg %p1726_p0 }
  0x1d   : > { %p1734_p10 = pnand %p1733_p8, %p1727_p3 }
  0x1f   : > { %1737 = shalt.err (!%p1734_p10)
}
  0x20   : > { %s1864_s16 = smov 128   ;;  %s1865_s17 = smov 8  }
  0x21   : > { %s2310_s1 = sld [smem:[#allocation16_spill]]  ;;  %s1749_s20 = scalar_lea.vmem %s236_s14, 8192 }
  0x22   : > { %p1750_p1 = scmp.ne.s32.totalorder %s236_s14, %s1749_s20  ;;  %p1757_p2 = scmp.lt.s32.totalorder %s236_s14, %s236_s14 }
  0x23   : > { %p1758_p6 = scmp.lt.s32.totalorder %s1749_s20, %s1749_s20 }
  0x24   : > { %p1752_p13 = pnand %p1750_p1, %p1714_p12 }
  0x25   : > { %p1759_p5 = por %p1758_p6, %p1757_p2 }
  0x26   : > { %p1753_p0 = pneg %p1752_p13 }
  0x27   : > { %1654 = dma.hbm_to_vmem [thread:$0]  (!%p1961_p11), %s2310_s1, 4096, %s220_s11, [#allocation10], %s1864_s16, %s1864_s16, %s1865_s17  }
  0x28   : > { %p1760_p8 = pnand %p1759_p5, %p1753_p0 }
  0x2a   : > { %1763 = shalt.err (!%p1760_p8)
}
  0x2b   : > { %s2311_s3 = sld [smem:[#allocation17_spill]]  ;;  %s1984_s23 = sadd.s32 1, %s1860_s27  }
  0x2c   : > { %s31_s29 = sadd.s32 1, %s1856_s26  ;;  %s28_s10 = ssub.s32 %s1860_s27, %s1984_s23 }
  0x2d   : > { %p38_p1 = scmp.ne.s32.totalorder %s1856_s26, %s1852_s25  ;;  %p29_p2 = scmp.eq.s32.totalorder %s28_s10, 0 }
  0x2e   : > { %p39_p6 = scmp.eq.s32.totalorder %s1860_s27, 0  ;;  %p2312_p12 = scmp.eq.s32.totalorder %s1933_s28, 7 }
  0x2f   : > { %p1668_p7 = scmp.lt.s32.totalorder %s1860_s27, 8  ;;  %s258_s13 = sand.u32 1, %s1856_s26  }
  0x30   : > { %p1994_p3 = por %p2312_p12, %p38_p1  ;;  %p40_p10 = por %p39_p6, %p38_p1 }
  0x31   : > { %1657 = dma.hbm_to_vmem [thread:$0]  (!%p1961_p11), %s2311_s3, 8192, %s236_s14, [#allocation10], %s1864_s16, %s1864_s16, %s1865_s17  }
  0x32   : > { %s2313_s11 = scalar_select %p1994_p3, 1, 0 }
  0x33   : > { %s2000_s12 = scalar_select %p29_p2, %s1856_s26, %s31_s29  }
  0x34   : > { %s1284_s15 = sshll.u32 %s258_s13, 3  ;;  %s1285_s14 = sshll.u32 %s1860_s27, 7 }
  0x35   : > { %s2007_s18 = scalar_lea.hbm %s2292_s0, %s1285_s14  ;;  %s262_s19 = scalar_lea.vmem [#allocation6], %s1284_s15 }
  0x36   : > { %s269_s20 = sshll.u32 %s262_s19, 4  ;;  %p2009_p11 = pnand %p1668_p7, %p40_p10  ;;  %s270_s20 = int_to_ptr.vmem [resolvable:$true] %s269_s20 }
  0x37   : > { %s259_s22 = scalar_lea.sflag [#allocation7], %s258_s13  ;;  %s1764_s29 = scalar_lea.hbm %s2007_s18, 128 }
  0x38   : > { %p1765_p13 = scmp.ne.s32.totalorder %s2007_s18, %s1764_s29  ;;  %p1766_p0 = pneg %p2009_p11 }
  0x39   : > { %s1769_s16 = scalar_lea.hbm %s2292_s0, 1024  ;;  %p1770_p1 = scmp.lt.s32.totalorder %s2007_s18, %s2292_s0 }
  0x3a   : > { %p1767_p5 = pnand %p1766_p0, %p1765_p13  ;;  %p1771_p2 = scmp.lt.s32.totalorder %s1769_s16, %s1764_s29 }
  0x3c   : > { %p1768_p8 = pneg %p1767_p5  ;;  %p1772_p6 = por %p1771_p2, %p1770_p1 }
  0x3e   : > { %p1773_p12 = pnand %p1772_p6, %p1768_p8 }
  0x40   : > { %1776 = shalt.err (!%p1773_p12)
}
  0x41   : > { %s1777_s19 = scalar_lea.vmem %s270_s20, 128  ;;  %s1866_s13 = smov [#allocation6]  }
  0x42   : > { %p1778_p7 = scmp.ne.s32.totalorder %s270_s20, %s1777_s19  ;;  %s1782_s1 = sshll.u32 %s1866_s13, 4  ;;  %s1783_s1 = int_to_ptr.vmem [resolvable:$false] %s1782_s1 }
  0x43   : > { %s1784_s3 = scalar_lea.vmem %s1783_s1, 256  ;;  %p1785_p13 = scmp.lt.s32.totalorder %s270_s20, %s1783_s1 }
  0x44   : > { %p1780_p10 = pnand %p1778_p7, %p1766_p0  ;;  %p1786_p5 = scmp.lt.s32.totalorder %s1784_s3, %s1777_s19 }
  0x46   : > { %p1781_p3 = pneg %p1780_p10  ;;  %p1787_p4 = por %p1786_p5, %p1785_p13 }
  0x48   : > { %p1788_p9 = pnand %p1787_p4, %p1781_p3 }
  0x4a   : > { %1791 = shalt.err (!%p1788_p9)
}
  0x4b   : > { %1661 = dma.hbm_to_vmem [thread:$0]  (!%p2009_p11), %s2007_s18, 128, %s270_s20, %s259_s22  }
  0x4c   : > { %p2315_p8 = scmp.ne.s32.totalorder %s2308_s9, 0 }
  0x4d   : > { %s2030_s29 = sand.u32 (!%p2315_p8), 1, %s1852_s25   ;;  %p2316_p0 = scmp.ne.s32.totalorder (!%p2315_p8), %s2306_s30, 0 }
  0x4e   : > { %278 = sbr.rel (%p2315_p8) target bundleno = 430 (0x1ae), region = 48  ;;  %s1287_s10 = sshll.u32 (!%p2315_p8), %s2030_s29, 3 }
  0x4f   : > { %s281_s14 = scalar_lea.sflag (!%p2315_p8), [#allocation7], %s2030_s29  ;;  %s2034_s1 = scalar_lea.vmem (!%p2315_p8), [#allocation6], %s1287_s10 }
  0x53   : > { %1835 = dma.done.wait (%p2316_p0), %s281_s14, 128  }
  0x54   : > { %1837 = vsyncadd (%p2316_p0), %s281_s14, 4294967168  ;;  %p2317_p4 = scmp.eq.s32.totalorder %s1933_s28, 0 }
  0x56   : > { %1839 = dma.done.wait (%p2317_p4), [#allocation10], 12288   ;;  %p2318_p9 = pmov %p2317_p4 }
  0x57   : > { %s2044_s3 = scalar_lea.vmem [#allocation12], %s1287_s10  ;;  %p2319_p3 = scmp.ne.s32.totalorder %s1933_s28, 0 }
  0x58   : > { %1841 = vsyncadd (%p2318_p9), [#allocation10], 4294955008 }
  0x59   : > { %326 = sbr.rel (%p2319_p3) target bundleno = 100 (0x64), region = 64 }
  0x5e   : > { %vm329_vm0 = vcmask 523264   ;;  %v1867_v0 = vmov 0.0   ;;  %v1868_v1 = vmov 0.2  }
  0x5f   : > { %327 = vst [vmem:[#allocation2] sm:$0xff] %v1867_v0  ;;  %334 = vst [vmem:[#allocation5] sm:$0xff] %v1867_v0 }
  0x60   : > { %335 = vst [vmem:[#allocation5 + $0x8] sm:$0xff] %v1867_v0  ;;  %336 = vst [vmem:[#allocation5 + $0x10] sm:$0xff] %v1867_v0 }
  0x61   : > { %337 = vst [vmem:[#allocation5 + $0x18] sm:$0xff] %v1867_v0  ;;  %328 = vst [vmem:[#allocation3] sm:$0xff] %v1868_v1 }
  0x62   : > { %330 = vst.msk [vmem:[#allocation4] sm:$0xff] %vm329_vm0, %v1867_v0  ;;  %331 = vst.msk [vmem:[#allocation4 + $0x8] sm:$0xff] %vm329_vm0, %v1867_v0 }
  0x63   : > { %332 = vst.msk [vmem:[#allocation4 + $0x10] sm:$0xff] %vm329_vm0, %v1867_v0  ;;  %333 = vst.msk [vmem:[#allocation4 + $0x18] sm:$0xff] %vm329_vm0, %v1867_v0 }
  0x64 PF: > { %v388_v2 = vld [vmem:[#allocation9 + $0x78] sm:$0xff]  ;;  %p338_p11 = scmp.lt.s32.totalorder %s1933_s28, 0  ;;  %v1869_v4 = vmov 0.0   ;;  %v387_v5 = vld [vmem:[#allocation9 + $0x70] sm:$0xff]  ;;  %s339_s30 = ssub.s32 0, %s1933_s28  ;;  %v386_v7 = vld [vmem:[#allocation9 + $0x68] sm:$0xff] }
  0x65   : > { %v363_v3 = vld [vmem:[#allocation9 + $0x38] sm:$0xff]  ;;  %1423 = vmatprep.subr.mxu0 %v1869_v4  ;;  %1442 = vmatprep.subr.mxu1 %v1869_v4  ;;  %v362_v6 = vld [vmem:[#allocation9 + $0x30] sm:$0xff]  ;;  %s2053_s9 = sadd.s32 3, %s1933_s28  ;;  %s1292_s18 = smin.u32 %s1933_s28, %s339_s30  ;;  %v361_v8 = vld [vmem:[#allocation9 + $0x28] sm:$0xff]  ;;  %vm353_vm1 = vcmask 523264   ;;  %vm1870_vm2 = vmmov 0  }
  0x66   : > { %1424 = vmatpush3.msra.mxu0 %v388_v2  ;;  %1443 = vmatpush3.msra.mxu1 %v363_v3  ;;  %p365_p1 = scmp.lt.s32.totalorder %s2053_s9, 0  ;;  %s341_s20 = sand.u32 3, %s1292_s18   ;;  %v385_v9 = vld [vmem:[#allocation9 + $0x60] sm:$0xff]  ;;  %v384_v11 = vld [vmem:[#allocation9 + $0x58] sm:$0xff]  ;;  %v383_v13 = vld [vmem:[#allocation9 + $0x50] sm:$0xff] }
  0x67   : > { %1425 = vmatprep.subr.mxu0 %v1869_v4  ;;  %1444 = vmatprep.subr.mxu1 %v1869_v4  ;;  %s366_s21 = ssub.s32 0, %s2053_s9  ;;  %s342_s22 = ssub.s32 0, %s341_s20  ;;  %v360_v10 = vld [vmem:[#allocation9 + $0x20] sm:$0xff]  ;;  %v359_v12 = vld [vmem:[#allocation9 + $0x18] sm:$0xff]  ;;  %v358_v14 = vld [vmem:[#allocation9 + $0x10] sm:$0xff] }
  0x68   : > { %1426 = vmatpush3.msra.mxu0 %v387_v5  ;;  %1445 = vmatpush3.msra.mxu1 %v362_v6  ;;  %s2061_s16 = smin.u32 %s366_s21, %s2053_s9  ;;  %s2327_s22 = smov (!%p338_p11, %s342_s22), %s341_s20  ;;  %v350_v15 = vld [vmem:[%s2034_s1] sm:$0xff]  ;;  %v382_v16 = vld [vmem:[#allocation9 + $0x48] sm:$0xff]  ;;  %v381_v18 = vld [vmem:[#allocation9 + $0x40] sm:$0xff] }
  0x69   : > { %1427 = vmatprep.subr.mxu0 %v1869_v4  ;;  %1446 = vmatprep.subr.mxu1 %v1869_v4  ;;  %s368_s17 = sand.u32 3, %s2061_s16   ;;  %s2069_s15 = sadd.s32 2, %s1933_s28  ;;  %v357_v17 = vld [vmem:[#allocation9 + $0x8] sm:$0xff]  ;;  %v356_v19 = vld [vmem:[#allocation9] sm:$0xff]  ;;  %v559_v20 = vld [vmem:[#allocation9 + $0xb8] sm:$0xff] }
  0x6a   : > { %1428 = vmatpush3.msra.mxu0 %v386_v7  ;;  %1447 = vmatpush3.msra.mxu1 %v361_v8  ;;  %p1294_p2 = scmp.lt.s32.totalorder %s2327_s22, 0  ;;  %s348_s19 = sadd.s32 4, %s2327_s22  ;;  %v658_v21 = vld [vmem:[#allocation9 + $0xf8] sm:$0xff]  ;;  %v558_v24 = vld [vmem:[#allocation9 + $0xb0] sm:$0xff]  ;;  %v557_v26 = vld [vmem:[#allocation9 + $0xa8] sm:$0xff] }
  0x6b   : > { %1429 = vmatprep.subr.mxu0 %v1869_v4  ;;  %1448 = vmatprep.subr.mxu1 %v1869_v4  ;;  %s369_s13 = ssub.s32 0, %s368_s17  ;;  %p536_p6 = scmp.lt.s32.totalorder %s2069_s15, 0  ;;  %v657_v25 = vld [vmem:[#allocation9 + $0xf0] sm:$0xff]  ;;  %v656_v27 = vld [vmem:[#allocation9 + $0xe8] sm:$0xff]  ;;  %v556_v28 = vld [vmem:[#allocation9 + $0xa0] sm:$0xff] }
  0x6c   : > { %1430 = vmatpush3.msra.mxu0 %v385_v9  ;;  %1449 = vmatpush3.msra.mxu1 %v360_v10  ;;  %s2329_s19 = smov (!%p1294_p2, %s348_s19), %s2327_s22  ;;  %s2331_s13 = smov (!%p365_p1, %s369_s13), %s368_s17  ;;  %v655_v29 = vld [vmem:[#allocation9 + $0xe0] sm:$0xff]  ;;  %v555_v30 = vld [vmem:[#allocation9 + $0x98] sm:$0xff]  ;;  %v554_v32 = vld [vmem:[#allocation9 + $0x90] sm:$0xff] }
  0x6d   : > { %1431 = vmatprep.subr.mxu0 %v1869_v4  ;;  %1450 = vmatprep.subr.mxu1 %v1869_v4  ;;  %s1295_s10 = sshll.u32 %s2329_s19, 3  ;;  %s537_s14 = ssub.s32 0, %s2069_s15  ;;  %v654_v31 = vld [vmem:[#allocation9 + $0xd8] sm:$0xff]  ;;  %v653_v33 = vld [vmem:[#allocation9 + $0xd0] sm:$0xff]  ;;  %v553_v34 = vld [vmem:[#allocation9 + $0x88] sm:$0xff] }
  0x6e   : > { %1432 = vmatpush3.msra.mxu0 %v384_v11  ;;  %1451 = vmatpush3.msra.mxu1 %v359_v12  ;;  %p1298_p12 = scmp.lt.s32.totalorder %s2331_s13, 0  ;;  %s352_s1 = scalar_lea.vmem [#allocation4], %s1295_s10  ;;  %v652_v35 = vld [vmem:[#allocation9 + $0xc8] sm:$0xff]  ;;  %v552_v36 = vld [vmem:[#allocation9 + $0x80] sm:$0xff]  ;;  %v777_v40 = vld [vmem:[#allocation11 + $0xf8] sm:$0xff] }
  0x6f   : > { %1433 = vmatprep.subr.mxu0 %v1869_v4  ;;  %1452 = vmatprep.subr.mxu1 %v1869_v4  ;;  %354 = vst.msk [vmem:[%s352_s1] sm:$0xff] %vm353_vm1, %v350_v15  ;;  %s375_s30 = sadd.s32 4, %s2331_s13  ;;  %s1302_s9 = smin.u32 %s537_s14, %s2069_s15  ;;  %v651_v37 = vld [vmem:[#allocation9 + $0xc0] sm:$0xff]  ;;  %v758_v41 = vld [vmem:[#allocation11 + $0x78] sm:$0xff]  ;;  %v776_v42 = vld [vmem:[#allocation11 + $0xf0] sm:$0xff] }
  0x70   : > { %1434 = vmatpush3.msra.mxu0 %v383_v13  ;;  %1453 = vmatpush3.msra.mxu1 %v358_v14  ;;  %s2333_s30 = smov (!%p1298_p12, %s375_s30), %s2331_s13  ;;  %s539_s18 = sand.u32 3, %s1302_s9   ;;  %v757_v43 = vld [vmem:[#allocation11 + $0x70] sm:$0xff]  ;;  %v775_v44 = vld [vmem:[#allocation11 + $0xe8] sm:$0xff]  ;;  %v774_v46 = vld [vmem:[#allocation11 + $0xe0] sm:$0xff] }
  0x71   : > { %1435 = vmatprep.subr.mxu0 %v1869_v4  ;;  %1454 = vmatprep.subr.mxu1 %v1869_v4  ;;  %s2096_s20 = sadd.s32 1, %s1933_s28  ;;  %s1299_s21 = sshll.u32 %s2333_s30, 3  ;;  %v756_v45 = vld [vmem:[#allocation11 + $0x68] sm:$0xff]  ;;  %v755_v47 = vld [vmem:[#allocation11 + $0x60] sm:$0xff]  ;;  %v773_v48 = vld [vmem:[#allocation11 + $0xd8] sm:$0xff] }
  0x72   : > { %1436 = vmatpush3.msra.mxu0 %v382_v16  ;;  %1455 = vmatpush3.msra.mxu1 %v357_v17  ;;  %s540_s22 = ssub.s32 0, %s539_s18  ;;  %s636_s16 = ssub.s32 0, %s2096_s20  ;;  %v754_v49 = vld [vmem:[#allocation11 + $0x58] sm:$0xff]  ;;  %v772_v50 = vld [vmem:[#allocation11 + $0xd0] sm:$0xff]  ;;  %v771_v52 = vld [vmem:[#allocation11 + $0xc8] sm:$0xff] }
  0x73   : > { %1437 = vmatprep.subr.mxu0 %v1869_v4  ;;  %1456 = vmatprep.subr.mxu1 %v1869_v4  ;;  %s2335_s22 = smov (!%p536_p6, %s540_s22), %s539_s18  ;;  %s378_s17 = scalar_lea.vmem [#allocation4], %s1299_s21  ;;  %v753_v51 = vld [vmem:[#allocation11 + $0x50] sm:$0xff]  ;;  %v752_v53 = vld [vmem:[#allocation11 + $0x48] sm:$0xff]  ;;  %v770_v54 = vld [vmem:[#allocation11 + $0xc0] sm:$0xff] }
  0x74   : > { %1438 = vmatpush3.msra.mxu0 %v381_v18  ;;  %1457 = vmatpush3.msra.mxu1 %v356_v19  ;;  %p1304_p7 = scmp.lt.s32.totalorder %s2335_s22, 0  ;;  %s546_s13 = sadd.s32 4, %s2335_s22  ;;  %v751_v55 = vld [vmem:[#allocation11 + $0x40] sm:$0xff]  ;;  %v769_v56 = vld [vmem:[#allocation11 + $0xb8] sm:$0xff]  ;;  %v768_v58 = vld [vmem:[#allocation11 + $0xb0] sm:$0xff] }
  0x75   : > { %1439 = vmatprep.mubr.msk.f32.mxu0 %vm1870_vm2, %v1869_v4  ;;  %1458 = vmatprep.mubr.msk.f32.mxu1 %vm1870_vm2, %v1869_v4  ;;  %p635_p10 = scmp.lt.s32.totalorder %s2096_s20, 0  ;;  %s1307_s14 = smin.u32 %s636_s16, %s2096_s20  ;;  %v750_v57 = vld [vmem:[#allocation11 + $0x38] sm:$0xff]  ;;  %v749_v59 = vld [vmem:[#allocation11 + $0x30] sm:$0xff]  ;;  %v767_v60 = vld [vmem:[#allocation11 + $0xa8] sm:$0xff] }
  0x76   : > { %1461 = vmatprep.subr.mxu0 %v1869_v4  ;;  %1480 = vmatprep.subr.mxu1 %v1869_v4  ;;  %v379_v22 = vld [vmem:[%s378_s17] sm:$0xff]  ;;  %s2337_s13 = smov (!%p1304_p7, %s546_s13), %s2335_s22  ;;  %s638_s15 = sand.u32 3, %s1307_s14   ;;  %v748_v61 = vld [vmem:[#allocation11 + $0x28] sm:$0xff]  ;;  %v765_v0 = vld [vmem:[#allocation11 + $0x98] sm:$0xff] }
  0x77   : > { %v355_v23 = vld [vmem:[%s352_s1] sm:$0xff]  ;;  %1440 = vmatmul.mubr.msk.f32.vlgmr.msra.gmra.mxu0 %vm353_vm1, %v379_v22  ;;  %s639_s1 = ssub.s32 0, %s638_s15  ;;  %s1305_s9 = sshll.u32 %s2337_s13, 3  ;;  %v746_v1 = vld [vmem:[#allocation11 + $0x18] sm:$0xff]  ;;  %v764_v2 = vld [vmem:[#allocation11 + $0x90] sm:$0xff] }
  0x78   : > { %1459 = vmatmul.mubr.msk.f32.vlgmr.msra.gmra.mxu1 %vm353_vm1, %v355_v23  ;;  %1462 = vmatpush3.msra.mxu0 %v559_v20  ;;  %s2339_s1 = smov (!%p635_p10, %s639_s1), %s638_s15  ;;  %s549_s22 = scalar_lea.vmem [#allocation4], %s1305_s9  ;;  %v766_v62 = vld [vmem:[#allocation11 + $0xa0] sm:$0xff]  ;;  %v745_v3 = vld [vmem:[#allocation11 + $0x10] sm:$0xff]  ;;  %v763_v5 = vld [vmem:[#allocation11 + $0x88] sm:$0xff] }
  0x79   : > { %1481 = vmatpush3.msra.mxu1 %v658_v21  ;;  %1463 = vmatprep.subr.mxu0 %v1869_v4  ;;  %p1309_p13 = scmp.lt.s32.totalorder %s2339_s1, 0  ;;  %s645_s18 = sadd.s32 4, %s2339_s1  ;;  %v550_v38 = vld [vmem:[%s549_s22] sm:$0xff]  ;;  %v744_v6 = vld [vmem:[#allocation11 + $0x8] sm:$0xff]  ;;  %v936_v11 = vld [vmem:[#allocation11 + $0x178] sm:$0xff] }
  0x7a   : > { %1482 = vmatprep.subr.mxu1 %v1869_v4  ;;  %1464 = vmatpush3.msra.mxu0 %v558_v24  ;;  %v747_v63 = vld [vmem:[#allocation11 + $0x20] sm:$0xff]  ;;  %s759_s17 = scalar_lea.vmem [#allocation5], %s1305_s9  ;;  %s741_s14 = scalar_lea.vmem [#allocation5], %s1299_s21  ;;  %v1026_v12 = vld [vmem:[#allocation11 + $0x1f8] sm:$0xff]  ;;  %v935_v13 = vld [vmem:[#allocation11 + $0x170] sm:$0xff] }
  0x7b   : > { %1483 = vmatpush3.msra.mxu1 %v657_v25  ;;  %1465 = vmatprep.subr.mxu0 %v1869_v4  ;;  %s2341_s18 = smov (!%p1309_p13, %s645_s18), %s2339_s1  ;;  %v762_v7 = vld [vmem:[#allocation11 + $0x80] sm:$0xff]  ;;  %v1025_v14 = vld [vmem:[#allocation11 + $0x1f0] sm:$0xff]  ;;  %v934_v15 = vld [vmem:[#allocation11 + $0x168] sm:$0xff]  ;;  %s2222_s21 = scalar_lea.vmem [#allocation5], %s1295_s10 }
  0x7c   : > { %1484 = vmatprep.subr.mxu1 %v1869_v4  ;;  %1466 = vmatpush3.msra.mxu0 %v557_v26  ;;  %s1310_s20 = sshll.u32 %s2341_s18, 3  ;;  %v743_v8 = vld [vmem:[#allocation11] sm:$0xff]  ;;  %v1024_v16 = vld [vmem:[#allocation11 + $0x1e8] sm:$0xff]  ;;  %v932_v19 = vld [vmem:[#allocation11 + $0x158] sm:$0xff]  ;;  %p1106_p5 = scmp.gt.s32.totalorder %s1933_s28, 0 }
  0x7d   : > { %1485 = vmatpush3.msra.mxu1 %v656_v27  ;;  %1467 = vmatprep.subr.mxu0 %v1869_v4  ;;  %s648_s16 = scalar_lea.vmem [#allocation4], %s1310_s20  ;;  %v760_v9 = vld [vmem:[%s759_s17] sm:$0xff]  ;;  %v1022_v20 = vld [vmem:[#allocation11 + $0x1d8] sm:$0xff]  ;;  %v931_v21 = vld [vmem:[#allocation11 + $0x150] sm:$0xff]  ;;  %s918_s30 = scalar_lea.vmem [#allocation5], %s1310_s20 }
  0x7e   : > { %1486 = vmatprep.subr.mxu1 %v1869_v4  ;;  %1468 = vmatpush3.msra.mxu0 %v556_v28  ;;  %v649_v39 = vld [vmem:[%s648_s16] sm:$0xff]  ;;  %v1021_v22 = vld [vmem:[#allocation11 + $0x1d0] sm:$0xff]  ;;  %v930_v23 = vld [vmem:[#allocation11 + $0x148] sm:$0xff]  ;;  %s1107_s19 = scalar_select %p1106_p5, 1, 0 }
  0x7f   : > { %1487 = vmatpush3.msra.mxu1 %v655_v29  ;;  %1469 = vmatprep.subr.mxu0 %v1869_v4  ;;  %v742_v10 = vld [vmem:[%s741_s14] sm:$0xff]  ;;  %v1020_v24 = vld [vmem:[#allocation11 + $0x1c8] sm:$0xff]  ;;  %v928_v27 = vld [vmem:[#allocation11 + $0x138] sm:$0xff]  ;;  %s1316_s17 = sshll.u32 %s1933_s28, 7  ;;  %s1174_s14 = sshll.u32 %s2044_s3, 4  ;;  %s2249_s14 = int_to_ptr.vmem [resolvable:$true] %s1174_s14 }
  0x80   : > { %1488 = vmatprep.subr.mxu1 %v1869_v4  ;;  %1470 = vmatpush3.msra.mxu0 %v555_v30  ;;  %v933_v17 = vld [vmem:[#allocation11 + $0x160] sm:$0xff]  ;;  %v1018_v28 = vld [vmem:[#allocation11 + $0x1b8] sm:$0xff]  ;;  %v927_v29 = vld [vmem:[#allocation11 + $0x130] sm:$0xff]  ;;  %s1108_s10 = scvt.s32.f32 %s1107_s19  ;;  %s1161_s28 = scalar_lea.sflag [#allocation8], %s2030_s29 }
  0x81   : > { %1489 = vmatpush3.msra.mxu1 %v654_v31  ;;  %1471 = vmatprep.subr.mxu0 %v1869_v4  ;;  %v1023_v18 = vld [vmem:[#allocation11 + $0x1e0] sm:$0xff]  ;;  %v1017_v30 = vld [vmem:[#allocation11 + $0x1b0] sm:$0xff]  ;;  %v926_v31 = vld [vmem:[#allocation11 + $0x128] sm:$0xff]  ;;  %s1792_s13 = scalar_lea.vmem %s2249_s14, 128  ;;  %p2320_p0 = scmp.ne.s32.totalorder %s2313_s11, 0 }
  0x82   : > { %1490 = vmatprep.subr.mxu1 %v1869_v4  ;;  %1472 = vmatpush3.msra.mxu0 %v554_v32  ;;  %v929_v25 = vld [vmem:[#allocation11 + $0x140] sm:$0xff]  ;;  %v1016_v32 = vld [vmem:[#allocation11 + $0x1a8] sm:$0xff]  ;;  %p1793_p8 = scmp.ne.s32.totalorder %s2249_s14, %s1792_s13  ;;  %s1871_s15 = smov [#allocation12]  }
  0x83   : > { %1491 = vmatpush3.msra.mxu1 %v653_v33  ;;  %1473 = vmatprep.subr.mxu0 %v1869_v4  ;;  %v1019_v26 = vld [vmem:[#allocation11 + $0x1c0] sm:$0xff]  ;;  %s1796_s1 = sshll.u32 %s1871_s15, 4  ;;  %s1797_s1 = int_to_ptr.vmem [resolvable:$false] %s1796_s1 }
  0x84   : > { %1492 = vmatprep.subr.mxu1 %v1869_v4  ;;  %1474 = vmatpush3.msra.mxu0 %v553_v34  ;;  %v925_v33 = vld [vmem:[#allocation11 + $0x120] sm:$0xff]  ;;  %p1794_p4 = pnand %p1793_p8, %p2320_p0  ;;  %s1798_s9 = scalar_lea.vmem %s1797_s1, 256 }
  0x85   : > { %1493 = vmatpush3.msra.mxu1 %v652_v35  ;;  %1475 = vmatprep.subr.mxu0 %v1869_v4  ;;  %v1015_v34 = vld [vmem:[#allocation11 + $0x1a0] sm:$0xff]  ;;  %v924_v35 = vld [vmem:[#allocation11 + $0x118] sm:$0xff]  ;;  %p1799_p3 = scmp.lt.s32.totalorder %s2249_s14, %s1797_s1  ;;  %p1800_p11 = scmp.lt.s32.totalorder %s1798_s9, %s1792_s13 }
  0x86   : > { %1494 = vmatprep.subr.mxu1 %v1869_v4  ;;  %1476 = vmatpush3.msra.mxu0 %v552_v36  ;;  %v1014_v36 = vld [vmem:[#allocation11 + $0x198] sm:$0xff]  ;;  %p1795_p9 = pneg %p1794_p4 }
  0x87   : > { %1477 = vmatprep.mubr.msk.f32.mxu0 %vm1870_vm2, %v1869_v4  ;;  %1495 = vmatpush3.msra.mxu1 %v651_v37  ;;  %v923_v37 = vld [vmem:[#allocation11 + $0x110] sm:$0xff]  ;;  %p1801_p1 = por %p1800_p11, %p1799_p3 }
  0x88   : > { %1478 = vmatmul.mubr.msk.f32.vlgmr.msra.gmra.mxu0 %vm353_vm1, %v550_v38  ;;  %1496 = vmatprep.mubr.msk.f32.mxu1 %vm1870_vm2, %v1869_v4  ;;  %v1013_v38 = vld [vmem:[#allocation11 + $0x190] sm:$0xff] }
  0x89   : > { %1499 = vmatprep.subr.mxu0 %v1869_v4  ;;  %1534 = vmatprep.subr.mxu1 %v1869_v4  ;;  %p1802_p2 = pnand %p1801_p1, %p1795_p9 }
  0x8a   : > { %1497 = vmatmul.mubr.msk.f32.vlgmr.msra.gmra.mxu1 %vm353_vm1, %v649_v39  ;;  %1500 = vmatpush3.msra.mxu0 %v777_v40  ;;  %v922_v39 = vld [vmem:[#allocation11 + $0x108] sm:$0xff] }
  0x8b   : > { %1535 = vmatpush3.msra.mxu1 %v758_v41  ;;  %1501 = vmatprep.subr.mxu0 %v1869_v4  ;;  %v1012_v40 = vld [vmem:[#allocation11 + $0x188] sm:$0xff]  ;;  %v921_v41 = vld [vmem:[#allocation11 + $0x100] sm:$0xff] }
  0x8c   : > { %1536 = vmatprep.subr.mxu1 %v1869_v4  ;;  %1502 = vmatpush3.msra.mxu0 %v776_v42  ;;  %v1011_v42 = vld [vmem:[#allocation11 + $0x180] sm:$0xff] }
  0x8d   : > { %1537 = vmatpush3.msra.mxu1 %v757_v43  ;;  %1503 = vmatprep.subr.mxu0 %v1869_v4  ;;  %v919_v43 = vld [vmem:[%s918_s30] sm:$0xff] }
  0x8e   : > { %1538 = vmatprep.subr.mxu1 %v1869_v4  ;;  %1504 = vmatpush3.msra.mxu0 %v775_v44  ;;  %v1009_v44 = vld [vmem:[%s2222_s21] sm:$0xff] }
  0x8f   : > { %1539 = vmatpush3.msra.mxu1 %v756_v45  ;;  %1505 = vmatprep.subr.mxu0 %v1869_v4 }
  0x90   : > { %1540 = vmatprep.subr.mxu1 %v1869_v4  ;;  %1506 = vmatpush3.msra.mxu0 %v774_v46 }
  0x91   : > { %1541 = vmatpush3.msra.mxu1 %v755_v47  ;;  %1507 = vmatprep.subr.mxu0 %v1869_v4 }
  0x92   : > { %1542 = vmatprep.subr.mxu1 %v1869_v4  ;;  %1508 = vmatpush3.msra.mxu0 %v773_v48 }
  0x93   : > { %1543 = vmatpush3.msra.mxu1 %v754_v49  ;;  %1509 = vmatprep.subr.mxu0 %v1869_v4 }
  0x94   : > { %1544 = vmatprep.subr.mxu1 %v1869_v4  ;;  %1510 = vmatpush3.msra.mxu0 %v772_v50 }
  0x95   : > { %1545 = vmatpush3.msra.mxu1 %v753_v51  ;;  %1511 = vmatprep.subr.mxu0 %v1869_v4 }
  0x96   : > { %1546 = vmatprep.subr.mxu1 %v1869_v4  ;;  %1512 = vmatpush3.msra.mxu0 %v771_v52 }
  0x97   : > { %1547 = vmatpush3.msra.mxu1 %v752_v53  ;;  %1513 = vmatprep.subr.mxu0 %v1869_v4 }
  0x98   : > { %1548 = vmatprep.subr.mxu1 %v1869_v4  ;;  %1514 = vmatpush3.msra.mxu0 %v770_v54 }
  0x99   : > { %1549 = vmatpush3.msra.mxu1 %v751_v55  ;;  %1515 = vmatprep.subr.mxu0 %v1869_v4 }
  0x9a   : > { %1550 = vmatprep.subr.mxu1 %v1869_v4  ;;  %1516 = vmatpush3.msra.mxu0 %v769_v56 }
  0x9b   : > { %1551 = vmatpush3.msra.mxu1 %v750_v57  ;;  %1517 = vmatprep.subr.mxu0 %v1869_v4 }
  0x9c   : > { %1552 = vmatprep.subr.mxu1 %v1869_v4  ;;  %1518 = vmatpush3.msra.mxu0 %v768_v58 }
  0x9d   : > { %1553 = vmatpush3.msra.mxu1 %v749_v59  ;;  %1519 = vmatprep.subr.mxu0 %v1869_v4 }
  0x9e   : > { %1554 = vmatprep.subr.mxu1 %v1869_v4  ;;  %1520 = vmatpush3.msra.mxu0 %v767_v60  ;;  %v1117_v60 = vlaneseq }
  0x9f   : > { %1555 = vmatpush3.msra.mxu1 %v748_v61  ;;  %1521 = vmatprep.subr.mxu0 %v1869_v4 }
  0xa0   : > { %1556 = vmatprep.subr.mxu1 %v1869_v4  ;;  %1522 = vmatpush3.msra.mxu0 %v766_v62  ;;  %v1118_v61 = vshrl.u32 %v1117_v60, 7 }
  0xa1   : > { %1557 = vmatpush3.msra.mxu1 %v747_v63  ;;  %1523 = vmatprep.subr.mxu0 %v1869_v4 }
  0xa2   : > { %1558 = vmatprep.subr.mxu1 %v1869_v4  ;;  %1524 = vmatpush3.msra.mxu0 %v765_v0 }
  0xa3   : > { %1559 = vmatpush3.msra.mxu1 %v746_v1  ;;  %1525 = vmatprep.subr.mxu0 %v1869_v4  ;;  %v1112_v1 = vld [vmem:[%s2297_s5] sm:$0x1] }
  0xa4   : > { %1560 = vmatprep.subr.mxu1 %v1869_v4  ;;  %1526 = vmatpush3.msra.mxu0 %v764_v2 }
  0xa5   : > { %1561 = vmatpush3.msra.mxu1 %v745_v3  ;;  %1527 = vmatprep.subr.mxu0 %v1869_v4  ;;  %v1119_v3 = vsub.s32 0, %v1118_v61 }
  0xa6   : > { %1562 = vmatprep.subr.mxu1 %v1869_v4  ;;  %1528 = vmatpush3.msra.mxu0 %v763_v5  ;;  %v1313_v5 = vld [vmem:[%s2296_s4] ss:$0 sm:$0xff] }
  0xa7   : > { %1563 = vmatpush3.msra.mxu1 %v744_v6  ;;  %1529 = vmatprep.subr.mxu0 %v1869_v4 }
  0xa8   : > { %1564 = vmatprep.subr.mxu1 %v1869_v4  ;;  %1530 = vmatpush3.msra.mxu0 %v762_v7 }
  0xa9   : > { %1531 = vmatprep.mubr.msk.f32.mxu0 %vm1870_vm2, %v1869_v4  ;;  %1565 = vmatpush3.msra.mxu1 %v743_v8 }
  0xaa   : > { %1532 = vmatmul.mubr.f32.vlgmr.msra.gmra.mxu0 %v760_v9  ;;  %1566 = vmatprep.mubr.msk.f32.mxu1 %vm1870_vm2, %v1869_v4  ;;  %v1123_v9 = vsub.f32 1.0, %v1112_v1 }
  0xab   : > { %1569 = vmatprep.subr.mxu0 %v1869_v4  ;;  %1604 = vmatprep.subr.mxu1 %v1869_v4 }
  0xac   : > { %1567 = vmatmul.mubr.f32.vlgmr.msra.gmra.mxu1 %v742_v10  ;;  %1570 = vmatpush3.msra.mxu0 %v936_v11  ;;  %v1312_v10 = vld [vmem:[%s2294_s2] ss:$0 sm:$0xff]  ;;  %v1109_v11 = vstv %s1108_s10  ;;  %s2247_s10 = scalar_lea.hbm %s2299_s7, %s1316_s17 }
  0xad   : > { %1605 = vmatpush3.msra.mxu1 %v1026_v12  ;;  %1571 = vmatprep.subr.mxu0 %v1869_v4  ;;  %v1114_v12 = vld [vmem:[#allocation3] sm:$0xff] }
  0xae   : > { %1606 = vmatprep.subr.mxu1 %v1869_v4  ;;  %1572 = vmatpush3.msra.mxu0 %v935_v13 }
  0xaf   : > { %1607 = vmatpush3.msra.mxu1 %v1025_v14  ;;  %1573 = vmatprep.subr.mxu0 %v1869_v4  ;;  %v1120_v14 = vrot.slane %v1112_v1, %v1119_v3 }
  0xb0   : > { %1608 = vmatprep.subr.mxu1 %v1869_v4  ;;  %1574 = vmatpush3.msra.mxu0 %v934_v15  ;;  %v1115_v15 = vld [vmem:[#allocation2] sm:$0xff] }
  0xb1   : > { %1609 = vmatpush3.msra.mxu1 %v1024_v16  ;;  %1575 = vmatprep.subr.mxu0 %v1869_v4 }
  0xb2   : > { %1610 = vmatprep.subr.mxu1 %v1869_v4  ;;  %1576 = vmatpush3.msra.mxu0 %v933_v17 }
  0xb3   : > { %1611 = vmatpush3.msra.mxu1 %v1023_v18  ;;  %1577 = vmatprep.subr.mxu0 %v1869_v4  ;;  %v1128_v18 = vrot.slane %v1123_v9, %v1119_v3 }
  0xb4   : > { %1612 = vmatprep.subr.mxu1 %v1869_v4  ;;  %1578 = vmatpush3.msra.mxu0 %v932_v19  ;;  %v1132_v19 = vmul.f32 1.8, %v1114_v12 }
  0xb5   : > { %1613 = vmatpush3.msra.mxu1 %v1022_v20  ;;  %1579 = vmatprep.subr.mxu0 %v1869_v4  ;;  %v1113_v20 = vld [vmem:[%s2298_s6] sm:$0x1] }
  0xb6   : > { %1614 = vmatprep.subr.mxu1 %v1869_v4  ;;  %1580 = vmatpush3.msra.mxu0 %v931_v21 }
  0xb7   : > { %1615 = vmatpush3.msra.mxu1 %v1021_v22  ;;  %1581 = vmatprep.subr.mxu0 %v1869_v4  ;;  %v1122_v22 = vmul.f32 %v1120_v14, %v1115_v15 }
  0xb8   : > { %1616 = vmatprep.subr.mxu1 %v1869_v4  ;;  %1582 = vmatpush3.msra.mxu0 %v930_v23 }
  0xb9   : > { %1617 = vmatpush3.msra.mxu1 %v1020_v24  ;;  %1583 = vmatprep.subr.mxu0 %v1869_v4  ;;  %v1133_v24 = vadd.f32 0.2, %v1132_v19 }
  0xba   : > { %1618 = vmatprep.subr.mxu1 %v1869_v4  ;;  %1584 = vmatpush3.msra.mxu0 %v929_v25  ;;  %v1148_v25 = vsub.f32 1.0, %v1113_v20 }
  0xbb   : > { %1619 = vmatpush3.msra.mxu1 %v1019_v26  ;;  %1585 = vmatprep.subr.mxu0 %v1869_v4 }
  0xbc   : > { %1620 = vmatprep.subr.mxu1 %v1869_v4  ;;  %1586 = vmatpush3.msra.mxu0 %v928_v27  ;;  %v1145_v27 = vrot.slane %v1113_v20, %v1119_v3 }
  0xbd   : > { %1621 = vmatpush3.msra.mxu1 %v1018_v28  ;;  %1587 = vmatprep.subr.mxu0 %v1869_v4 }
  0xbe   : > { %1622 = vmatprep.subr.mxu1 %v1869_v4  ;;  %1588 = vmatpush3.msra.mxu0 %v927_v29  ;;  %v1153_v29 = vrot.slane %v1148_v25, %v1119_v3 }
  0xbf   : > { %1623 = vmatpush3.msra.mxu1 %v1017_v30  ;;  %1589 = vmatprep.subr.mxu0 %v1869_v4  ;;  %v1147_v30 = vmul.f32 %v1145_v27, %v1114_v12 }
  0xc0   : > { %1624 = vmatprep.subr.mxu1 %v1869_v4  ;;  %1590 = vmatpush3.msra.mxu0 %v926_v31 }
  0xc1   : > { %1625 = vmatpush3.msra.mxu1 %v1016_v32  ;;  %1591 = vmatprep.subr.mxu0 %v1869_v4 }
  0xc2   : > { %1626 = vmatprep.subr.mxu1 %v1869_v4  ;;  %1592 = vmatpush3.msra.mxu0 %v925_v33 }
  0xc3   : > { %1627 = vmatpush3.msra.mxu1 %v1015_v34  ;;  %1593 = vmatprep.subr.mxu0 %v1869_v4 }
  0xc4   : > { %1628 = vmatprep.subr.mxu1 %v1869_v4  ;;  %1594 = vmatpush3.msra.mxu0 %v924_v35 }
  0xc5   : > { %1629 = vmatpush3.msra.mxu1 %v1014_v36  ;;  %1595 = vmatprep.subr.mxu0 %v1869_v4 }
  0xc6   : > { %1630 = vmatprep.subr.mxu1 %v1869_v4  ;;  %1596 = vmatpush3.msra.mxu0 %v923_v37 }
  0xc7   : > { %1631 = vmatpush3.msra.mxu1 %v1013_v38  ;;  %1597 = vmatprep.subr.mxu0 %v1869_v4 }
  0xc8   : > { %1632 = vmatprep.subr.mxu1 %v1869_v4  ;;  %1598 = vmatpush3.msra.mxu0 %v922_v39 }
  0xc9   : > { %1633 = vmatpush3.msra.mxu1 %v1012_v40  ;;  %1599 = vmatprep.subr.mxu0 %v1869_v4 }
  0xca   : > { %1634 = vmatprep.subr.mxu1 %v1869_v4  ;;  %1600 = vmatpush3.msra.mxu0 %v921_v41 }
  0xcb   : > { %1601 = vmatprep.mubr.msk.f32.mxu0 %vm1870_vm2, %v1869_v4  ;;  %1635 = vmatpush3.msra.mxu1 %v1011_v42 }
  0xcc   : > { %1636 = vmatprep.mubr.msk.f32.mxu1 %vm1870_vm2, %v1869_v4  ;;  %1602 = vmatmul.mubr.f32.vlgmr.msra.gmra.mxu0 %v919_v43 }
  0xcd   : > { %1637 = vmatmul.mubr.f32.vlgmr.msra.gmra.mxu1 %v1009_v44 }
 0x137   : > { %v458_v45 = vpop.f32.mrf.mxu0 }
 0x138   : > { %v531_v46 = vpop.f32.mrf.mxu1 }
 0x139   : > { %v532_v47 = vadd.f32 %v531_v46, %v458_v45  ;;  %v1441_v48 = vpop.f32.mrf.mxu0 }
 0x13a   : > { %v1460_v49 = vpop.f32.mrf.mxu1 }
 0x148   : > { %v629_v50 = vpop.f32.mrf.mxu0 }
 0x149   : > { %v633_v51 = vadd.f32 %v629_v50, %v532_v47 }
 0x14a   : > { %v728_v52 = vpop.f32.mrf.mxu1  ;;  %v1479_v53 = vpop.f32.mrf.mxu0 }
 0x14b   : > { %v732_v54 = vadd.f32 %v728_v52, %v633_v51 }
 0x14c   : > { %v1498_v55 = vpop.f32.mrf.mxu1 }
 0x14d   : > { %v740_v16 = vadd.f32 %v1312_v10, %v732_v54 }
 0x16a   : > { %v844_v56 = vpop.f32.mrf.mxu0 }
 0x16c   : > { %v914_v57 = vpop.f32.mrf.mxu1  ;;  %v1533_v58 = vpop.f32.mrf.mxu0 }
 0x16d   : > { %v915_v62 = vadd.f32 %v914_v57, %v844_v56 }
 0x16e   : > { %v1568_v59 = vpop.f32.mrf.mxu1 }
 0x18c   : > { %v1003_v63 = vpop.f32.mrf.mxu0 }
 0x18d   : > { %v1093_v0 = vpop.f32.mrf.mxu1  ;;  %v1007_v2 = vadd.f32 %v1003_v63, %v915_v62 }
 0x18e   : > { %v1603_v6 = vpop.f32.mrf.mxu0 }
 0x18f   : > { %v1638_v7 = vpop.f32.mrf.mxu1  ;;  %v1097_v8 = vadd.f32 %v1093_v0, %v1007_v2 }
 0x191   : > { %v1105_v13 = vadd.f32 %v1313_v5, %v1097_v8 }
 0x193   : > { %v1110_v17 = vmul.f32 %v1109_v11, %v1105_v13 }
 0x195   : > { %v1111_v21 = vadd.f32 %v1110_v17, %v740_v16 }
 0x197   : > { %v1130_v23 = vmul.f32 %v1128_v18, %v1111_v21 }
 0x199   : > { %v1131_v26 = vadd.f32 %v1130_v23, %v1122_v22 }
 0x19b   : > { %v1134_v28 = vsub.f32 %v1131_v26, %v1133_v24 }
 0x19d   : > { %vm1135_vm3 = vcmp.gt.f32.partialorder %v1134_v28, 0.0 }
 0x19e   : > { %v1314_v31 = vsel %vm1135_vm3, 1.0, %v1869_v4 }
 0x19f   : > { %v1138_v32 = vmul.f32 %v1314_v31, %v1133_v24  ;;  %v1155_v33 = vmul.f32 %v1314_v31, %v1153_v29  ;;  %1158 = vst [vmem:[%s2044_s3] sm:$0xff] %v1314_v31  ;;  %1159 = vst [vmem:[%s2222_s21] sm:$0xff] %v1314_v31 }
 0x1a0   : > { %1805 = shalt.err (!%p1802_p2)
}
 0x1a1   : > { %s1806_s3 = scalar_lea.hbm %s2247_s10, 128  ;;  %s1810_s18 = scalar_lea.hbm %s2299_s7, 1024 }
 0x1a2   : > { %p1807_p6 = scmp.ne.s32.totalorder %s2247_s10, %s1806_s3  ;;  %p1811_p10 = scmp.lt.s32.totalorder %s2247_s10, %s2299_s7 }
 0x1a3   : > { %p1812_p13 = scmp.lt.s32.totalorder %s1810_s18, %s1806_s3 }
 0x1a4   : > { %p1808_p12 = pnand %p1807_p6, %p2320_p0 }
 0x1a5   : > { %p1813_p5 = por %p1812_p13, %p1811_p10 }
 0x1a6   : > { %p1809_p7 = pneg %p1808_p12 }
 0x1a8   : > { %p1814_p8 = pnand %p1813_p5, %p1809_p7 }
 0x1aa   : > { %1817 = shalt.err (!%p1814_p8)
}
 0x1ab   : > { %1649 = dma.vmem_to_hbm [thread:$0]  (%p2320_p0), %s2249_s14, 128, %s2247_s10, %s1161_s28   ;;  %v1139_v4 = vsub.f32 %v1131_v26, %v1138_v32  ;;  %v1156_v34 = vadd.f32 %v1155_v33, %v1147_v30 }
 0x1ad   : > { %1140 = vst [vmem:[#allocation2] sm:$0xff] %v1139_v4  ;;  %1157 = vst [vmem:[#allocation3] sm:$0xff] %v1156_v34 }
 0x1ae PF: > { %p1671_p4 = scmp.ge.s32.totalorder %s1860_s27, 2  ;;  %s1186_s16 = sand.u32 1, %s1848_s24  }
 0x1af   : > { %p2321_p9 = scmp.ne.s32.totalorder %s2307_s8, 0  ;;  %s1187_s17 = scalar_lea.sflag [#allocation8], %s1186_s16 }
 0x1b1   : > { %p1663_p3 = pnand %p1671_p4, %p2321_p9 }
 0x1b3   : > { %p1664_p11 = pneg %p1663_p3 }
 0x1b5   : > { %1843 = dma.done.wait (%p1664_p11), %s1187_s17, 128  }
 0x1b6   : > { %1845 = vsyncadd (%p1664_p11), %s1187_s17, 4294967168  ;;  %p21_p0 = scmp.ge.s32.totalorder %s1984_s23, 10   ;;  %s2322_s24 = smov %s1852_s25 }
 0x1b7   : > { %s2323_s25 = smov %s1856_s26  ;;  %s2324_s26 = smov %s2000_s12 }
 0x1b8   : > { %s2325_s27 = smov %s1984_s23  ;;  %23 = sbr.rel (!%p21_p0) target bundleno = 9 (0x9), region = 119 }
 0x1bd   :  { %1192 = vsyncpa [#allocation7], 1 }
 0x1be   :  { %1194 = vsyncpa [#allocation7 + $0x1], 1 }
 0x1bf   :  { %1195 = vsyncpa [#allocation10], 1 }
 0x1c0   :  { %1196 = vsyncpa [#allocation8], 1 }
 0x1c1   :  { %1198 = vsyncpa [#allocation8 + $0x1], 1 }

</bundles_post_ra>
